<compile_context>
chip_gen: v7x
topology: tpu7x:2x2x1
jax: 0.10.0
libtpu: 0.0.40
codegen_flags: <defaults>
</compile_context>

<pallas_src>
import jax
import jax.numpy as jnp
from jax import lax
from jax.experimental import pallas as pl
from jax.experimental.pallas import tpu as pltpu


HIDDEN_SIZE = 32
NUM_LAYERS = 2
INPUT_SIZE = 2048


def _lstm2_kernel(x_ref, wih0_ref, whh0_ref, b0_ref, w1_ref, b1_ref,
                  out_ref, gx_ref):
    """2-layer LSTM for one batch block; writes the top-layer h at t = T-1.

    Gate column order is (i, f, o, g) — permuted at param-prep time.

    x_ref   : (TB*T, I)  bf16  batch-major rows: flat row = b*T + t
    wih0_ref: (I, 4H)    bf16  layer-0 input weights (pre-transposed, permuted)
    whh0_ref: (H, 4H)    f32   layer-0 recurrent weights (pre-transposed)
    b0_ref  : (1, 4H)    f32   b_ih_l0 + b_hh_l0
    w1_ref  : (2H, 4H)   f32   fused [W_ih_l1; W_hh_l1] (pre-transposed)
    b1_ref  : (1, 4H)    f32   b_ih_l1 + b_hh_l1
    out_ref : (TB, H)    f32
    gx_ref  : (TB*T, 4H) f32   scratch: layer-0 input projection (+ bias)
    """
    TB, H = out_ref.shape
    T = gx_ref.shape[0] // TB
    H4 = 4 * H

    # --- Prologue: ONE fused matmul for the layer-0 input projection. -------
    # The K=2048 contraction runs once per block at M = TB*T (high MXU
    # occupancy even for small TB); the serial recurrence below only pays the
    # tiny K=H recurrent matmuls + gate math.
    gx_ref[...] = (
        jnp.dot(x_ref[...], wih0_ref[...], preferred_element_type=jnp.float32)
        + jnp.broadcast_to(b0_ref[...], (TB * T, H4)))

    # Hoisted loop invariants (JAX does not CSE broadcasts inside loops).
    whh0 = whh0_ref[...]                               # (H, 4H)
    w1 = w1_ref[...]                                   # (2H, 4H)
    w1a = w1[:H]                                       # W_ih_l1^T
    w1b = w1[H:]                                       # W_hh_l1^T
    b1 = jnp.broadcast_to(b1_ref[...], (TB, H4))

    def gates_to_hc(gates, c):
        # Gate order (i, f, o, g): sigmoid over 3H lanes, tanh over H lanes.
        s = jax.nn.sigmoid(gates[:, :3 * H])
        g = jnp.tanh(gates[:, 3 * H:])
        i = s[:, 0 * H:1 * H]
        f = s[:, 1 * H:2 * H]
        o = s[:, 2 * H:3 * H]
        c_new = f * c + i * g
        h_new = o * jnp.tanh(c_new)
        return h_new, c_new

    zeros = jnp.zeros((TB, H), jnp.float32)
    h0, c0, h1, c1 = zeros, zeros, zeros, zeros

    # Statically unrolled time loop (T is small & static): all slices below
    # are static, and layer-1(t) can overlap layer-0(t+1) in the MXU pipeline.
    for t in range(T):
        # Rows for time step t across the batch live at b*T + t -> strided
        # sublane load from the gx scratch.
        gx_t = gx_ref[pl.ds(t, TB, stride=T), :]                    # (TB, 4H)
        g0 = gx_t + jnp.dot(h0, whh0, preferred_element_type=jnp.float32)
        h0, c0 = gates_to_hc(g0, c0)
        # Layer 1: no per-step concat — two accumulating K=H dots.
        g1 = (jnp.dot(h0, w1a, preferred_element_type=jnp.float32)
              + jnp.dot(h1, w1b, preferred_element_type=jnp.float32) + b1)
        h1, c1 = gates_to_hc(g1, c1)

    out_ref[...] = h1


@jax.jit
def encoder_rnn_forward(x, wih0_t, whh0_t, b0, w1, b1):
    """x: (batch, seq, input_size) -> (batch, hidden) f32 (== out[:, -1, :]).

    For peak HBM bandwidth pass x already in bf16 (otherwise the cast below
    costs one extra conversion pass over x outside the kernel).
    """
    B, T, I = x.shape
    H = whh0_t.shape[0]
    H4 = 4 * H

    if x.dtype != jnp.bfloat16:
        x = x.astype(jnp.bfloat16)

    # Pad batch to a multiple of 8 sublanes; whenever Bp >= 16 pick TB so the
    # grid has >= 2 blocks, so ("parallel",) splits batch across v7x's two
    # TensorCores (no effect on v5e/v6e, which have a single TC).
    Bp = max(8, -(-B // 8) * 8)
    if Bp >= 16:
        TB = min(128, max(8, (Bp // 2) // 8 * 8))
    else:
        TB = Bp
    Bp = -(-Bp // TB) * TB
    if Bp != B:
        x = jnp.pad(x, ((0, Bp - B), (0, 0), (0, 0)))

    # Batch-first is preserved: this reshape is a free bitcast (no HBM pass),
    # unlike the transpose the previous version materialized.
    x2d = x.reshape(Bp * T, I)

    grid = (Bp // TB,)
    out = pl.pallas_call(
        _lstm2_kernel,
        out_shape=jax.ShapeDtypeStruct((Bp, H), jnp.float32),
        grid=grid,
        in_specs=[
            pl.BlockSpec((TB * T, I), lambda b: (b, 0)),    # x rows (batch-blocked)
            pl.BlockSpec((I, H4), lambda b: (0, 0)),        # W_ih_l0^T (bf16)
            pl.BlockSpec((H, H4), lambda b: (0, 0)),        # W_hh_l0^T
            pl.BlockSpec((1, H4), lambda b: (0, 0)),        # b0
            pl.BlockSpec((2 * H, H4), lambda b: (0, 0)),    # fused [W_ih;W_hh]_l1^T
            pl.BlockSpec((1, H4), lambda b: (0, 0)),        # b1
        ],
        out_specs=pl.BlockSpec((TB, H), lambda b: (b, 0)),
        scratch_shapes=[pltpu.VMEM((TB * T, H4), jnp.float32)],
        compiler_params=pltpu.CompilerParams(
            dimension_semantics=("parallel",)),
    )(x2d, wih0_t, whh0_t, b0, w1, b1)
    return out[:B]


# --------------------- deterministic parameter construction ------------------

def _orthogonal(key, shape, gain):
    rows, cols = shape
    flat = jax.random.normal(key, (max(rows, cols), min(rows, cols)), jnp.float32)
    q, r = jnp.linalg.qr(flat)
    q = q * jnp.sign(jnp.diagonal(r))[None, :]
    if rows < cols:
        q = q.T
    return gain * q[:rows, :cols]


def _uniform(key, shape, k):
    return jax.random.uniform(key, shape, jnp.float32, minval=-k, maxval=k)


def make_params(key, input_size, hidden_size):
    """PyTorch-layout LSTM params (gate row order i, f, g, o), as EncoderRNN inits."""
    H4 = 4 * hidden_size
    k = 1.0 / (hidden_size ** 0.5)
    gain = 2.0 ** 0.5
    keys = jax.random.split(key, 8)
    return dict(
        # Layer 0: orthogonal init (as in the module). Layer 1: default uniform.
        w_ih_l0=_orthogonal(keys[0], (H4, input_size), gain),   # (4H, I)
        w_hh_l0=_orthogonal(keys[1], (H4, hidden_size), gain),  # (4H, H)
        b_ih_l0=_uniform(keys[2], (H4,), k),
        b_hh_l0=_uniform(keys[3], (H4,), k),
        w_ih_l1=_uniform(keys[4], (H4, hidden_size), k),
        w_hh_l1=_uniform(keys[5], (H4, hidden_size), k),
        b_ih_l1=_uniform(keys[6], (H4,), k),
        b_hh_l1=_uniform(keys[7], (H4,), k),
    )


def prepare_kernel_params(p):
    """PyTorch layout -> kernel layout.

    - permute gate blocks (i, f, g, o) -> (i, f, o, g) so the kernel runs
      sigmoid on contiguous lanes [0, 3H) and tanh on [3H, 4H) only,
    - fold b_ih + b_hh,
    - pre-transpose to (in, 4H) and fuse layer-1 [W_ih; W_hh],
    - cast the layer-0 input weights to bf16 (matmuls accumulate in f32).
    """
    H = p["w_hh_l0"].shape[1]

    def perm(w):  # permute gate-major blocks along axis 0
        return jnp.concatenate(
            [w[0:H], w[H:2 * H], w[3 * H:4 * H], w[2 * H:3 * H]], axis=0)

    wih0 = perm(p["w_ih_l0"])
    whh0 = perm(p["w_hh_l0"])
    b0 = perm(p["b_ih_l0"] + p["b_hh_l0"])
    wih1 = perm(p["w_ih_l1"])
    whh1 = perm(p["w_hh_l1"])
    b1 = perm(p["b_ih_l1"] + p["b_hh_l1"])

    return dict(
        wih0_t=wih0.T.astype(jnp.bfloat16),              # (I, 4H) bf16
        whh0_t=whh0.T,                                   # (H, 4H) f32
        b0=b0[None, :],                                  # (1, 4H)
        w1=jnp.concatenate([wih1.T, whh1.T], axis=0),    # (2H, 4H)
        b1=b1[None, :],                                  # (1, 4H)
    )


# ------------------------------- pure-JAX reference ---------------------------

def _reference_forward(x, p):
    """f32, HIGHEST-precision reference of the PyTorch eval forward."""
    B, T, _ = x.shape
    H = p["w_hh_l0"].shape[1]
    hp = lax.Precision.HIGHEST

    def cell(x_t, h, c, w_ih, w_hh, b_ih, b_hh):
        g = (jnp.dot(x_t, w_ih.T, precision=hp) + b_ih
             + jnp.dot(h, w_hh.T, precision=hp) + b_hh)
        i = jax.nn.sigmoid(g[:, 0 * H:1 * H])
        f = jax.nn.sigmoid(g[:, 1 * H:2 * H])
        gg = jnp.tanh(g[:, 2 * H:3 * H])
        o = jax.nn.sigmoid(g[:, 3 * H:4 * H])
        c = f * c + i * gg
        return o * jnp.tanh(c), c

    h0 = c0 = h1 = c1 = jnp.zeros((B, H), jnp.float32)
    for t in range(T):
        h0, c0 = cell(x[:, t, :], h0, c0,
                      p["w_ih_l0"], p["w_hh_l0"], p["b_ih_l0"], p["b_hh_l0"])
        h1, c1 = cell(h0, h1, c1,
                      p["w_ih_l1"], p["w_hh_l1"], p["b_ih_l1"], p["b_hh_l1"])
    return h1


if __name__ == "__main__":
    batch, seq = 2, 8

    key = jax.random.PRNGKey(0)
    k_x, k_p = jax.random.split(key)
    x = jax.random.normal(k_x, (batch, seq, INPUT_SIZE), jnp.float32)

    torch_params = make_params(k_p, INPUT_SIZE, HIDDEN_SIZE)
    kparams = prepare_kernel_params(torch_params)

    out = encoder_rnn_forward(x, kparams["wih0_t"], kparams["whh0_t"],
                              kparams["b0"], kparams["w1"], kparams["b1"])
    out = jax.block_until_ready(out)
    assert out.shape == (batch, HIDDEN_SIZE), out.shape

    # Tolerance note: bf16 quantization of the K=2048 input projection bounds
    # the per-gate error at ~5e-3, propagating to <~1e-2 at the output; 2e-2
    # keeps margin while still catching gate-order / indexing bugs.
    ref = _reference_forward(x, torch_params)
    assert jnp.allclose(out, ref, atol=2e-2, rtol=2e-2), \
        float(jnp.max(jnp.abs(out - ref)))
    print("KERNEL_OK")
</pallas_src>

<mosaic_0001>
module attributes {stable_mosaic.version = 11 : i64} {
  func.func @_lstm2_kernel(%arg0: i32, %arg1: memref<64x2048xbf16, #tpu.memory_space<vmem>>, %arg2: memref<2048x128xbf16, #tpu.memory_space<vmem>>, %arg3: memref<32x128xf32, #tpu.memory_space<vmem>>, %arg4: memref<1x128xf32, #tpu.memory_space<vmem>>, %arg5: memref<64x128xf32, #tpu.memory_space<vmem>>, %arg6: memref<1x128xf32, #tpu.memory_space<vmem>>, %arg7: memref<8x32xf32, #tpu.memory_space<vmem>>, %arg8: memref<64x128xf32, #tpu.memory_space<vmem>>) attributes {dimension_semantics = [#tpu.dimension_semantics<parallel>], iteration_bounds = array<i64: 1>, scalar_prefetch = 0 : i64, scratch_operands = 1 : i64, tpu.core_type = #tpu.core_type<tc>, window_params = [{transform_indices = @transform_0, window_bounds = array<i64: 64, 2048>}, {pipeline_mode = #tpu.pipeline_mode<synchronous>, transform_indices = @transform_1, window_bounds = array<i64: 2048, 128>}, {pipeline_mode = #tpu.pipeline_mode<synchronous>, transform_indices = @transform_2, window_bounds = array<i64: 32, 128>}, {pipeline_mode = #tpu.pipeline_mode<synchronous>, transform_indices = @transform_3, window_bounds = array<i64: 1, 128>}, {pipeline_mode = #tpu.pipeline_mode<synchronous>, transform_indices = @transform_4, window_bounds = array<i64: 64, 128>}, {pipeline_mode = #tpu.pipeline_mode<synchronous>, transform_indices = @transform_5, window_bounds = array<i64: 1, 128>}, {transform_indices = @transform_6, window_bounds = array<i64: 8, 32>}]} {
    %c0 = arith.constant 0 : index
    %c0_0 = arith.constant 0 : index
    %0 = vector.load %arg1[%c0, %c0_0] : memref<64x2048xbf16, #tpu.memory_space<vmem>>, vector<64x2048xbf16>
    %c0_1 = arith.constant 0 : index
    %c0_2 = arith.constant 0 : index
    %1 = vector.load %arg2[%c0_1, %c0_2] : memref<2048x128xbf16, #tpu.memory_space<vmem>>, vector<2048x128xbf16>
    %cst = arith.constant dense<0.000000e+00> : vector<64x128xf32>
    %2 = tpu.matmul %0, %1, %cst {dimension_numbers = #tpu.dot_dimension_numbers<[1], [0], [0], [1], [0, 0, 1, 1], [], []>} : vector<64x2048xbf16>, vector<2048x128xbf16>, vector<64x128xf32> -> vector<64x128xf32>
    %c0_3 = arith.constant 0 : index
    %c0_4 = arith.constant 0 : index
    %3 = vector.load %arg4[%c0_3, %c0_4] : memref<1x128xf32, #tpu.memory_space<vmem>>, vector<1x128xf32>
    %4 = vector.shape_cast %3 : vector<1x128xf32> to vector<1x128xf32>
    %5 = vector.broadcast %4 : vector<1x128xf32> to vector<64x128xf32>
    %6 = arith.addf %2, %5 : vector<64x128xf32>
    %c0_5 = arith.constant 0 : index
    %c0_6 = arith.constant 0 : index
    %7 = vector.load %arg8[%c0_5, %c0_6] : memref<64x128xf32, #tpu.memory_space<vmem>>, vector<64x128xf32>
    tpu.vector_store %arg8[%c0_5, %c0_6], %6 {strides = array<i32>} : memref<64x128xf32, #tpu.memory_space<vmem>>, vector<64x128xf32>,
    %c0_7 = arith.constant 0 : index
    %c0_8 = arith.constant 0 : index
    %8 = vector.load %arg3[%c0_7, %c0_8] : memref<32x128xf32, #tpu.memory_space<vmem>>, vector<32x128xf32>
    %c0_9 = arith.constant 0 : index
    %c0_10 = arith.constant 0 : index
    %9 = vector.load %arg5[%c0_9, %c0_10] : memref<64x128xf32, #tpu.memory_space<vmem>>, vector<64x128xf32>
    %10 = vector.extract_strided_slice %9 {offsets = [0, 0], sizes = [32, 128], strides = [1, 1]} : vector<64x128xf32> to vector<32x128xf32>
    %11 = vector.extract_strided_slice %9 {offsets = [32, 0], sizes = [32, 128], strides = [1, 1]} : vector<64x128xf32> to vector<32x128xf32>
    %c0_11 = arith.constant 0 : index
    %c0_12 = arith.constant 0 : index
    %12 = vector.load %arg6[%c0_11, %c0_12] : memref<1x128xf32, #tpu.memory_space<vmem>>, vector<1x128xf32>
    %13 = vector.shape_cast %12 : vector<1x128xf32> to vector<1x128xf32>
    %14 = vector.broadcast %13 : vector<1x128xf32> to vector<8x128xf32>
    %cst_13 = arith.constant 0.000000e+00 : f32
    %15 = vector.broadcast %cst_13 : f32 to vector<8x32xf32>
    %c0_14 = arith.constant 0 : index
    %c0_15 = arith.constant 0 : index
    %16 = tpu.strided_load %arg8[%c0_14, %c0_15] {strides = array<i32: 8, 1>} : memref<64x128xf32, #tpu.memory_space<vmem>>, vector<8x128xf32>
    %cst_16 = arith.constant dense<0.000000e+00> : vector<8x128xf32>
    %17 = tpu.matmul %15, %8, %cst_16 {dimension_numbers = #tpu.dot_dimension_numbers<[1], [0], [0], [1], [0, 0, 1, 1], [], []>} : vector<8x32xf32>, vector<32x128xf32>, vector<8x128xf32> -> vector<8x128xf32>
    %18 = arith.addf %16, %17 : vector<8x128xf32>
    %19 = vector.extract_strided_slice %18 {offsets = [0, 0], sizes = [8, 96], strides = [1, 1]} : vector<8x128xf32> to vector<8x96xf32>
    %20 = arith.negf %19 : vector<8x96xf32>
    %21 = math.exp %20 : vector<8x96xf32>
    %cst_17 = arith.constant 1.000000e+00 : f32
    %22 = vector.broadcast %cst_17 : f32 to vector<8x96xf32>
    %23 = arith.addf %22, %21 : vector<8x96xf32>
    %24 = arith.divf %22, %23 : vector<8x96xf32>
    %25 = vector.extract_strided_slice %18 {offsets = [0, 96], sizes = [8, 32], strides = [1, 1]} : vector<8x128xf32> to vector<8x32xf32>
    %26 = math.tanh %25 : vector<8x32xf32>
    %27 = vector.extract_strided_slice %24 {offsets = [0, 0], sizes = [8, 32], strides = [1, 1]} : vector<8x96xf32> to vector<8x32xf32>
    %28 = vector.extract_strided_slice %24 {offsets = [0, 32], sizes = [8, 32], strides = [1, 1]} : vector<8x96xf32> to vector<8x32xf32>
    %29 = vector.extract_strided_slice %24 {offsets = [0, 64], sizes = [8, 32], strides = [1, 1]} : vector<8x96xf32> to vector<8x32xf32>
    %30 = arith.mulf %28, %15 : vector<8x32xf32>
    %31 = arith.mulf %27, %26 : vector<8x32xf32>
    %32 = arith.addf %30, %31 : vector<8x32xf32>
    %33 = math.tanh %32 : vector<8x32xf32>
    %34 = arith.mulf %29, %33 : vector<8x32xf32>
    %cst_18 = arith.constant dense<0.000000e+00> : vector<8x128xf32>
    %35 = tpu.matmul %34, %10, %cst_18 {dimension_numbers = #tpu.dot_dimension_numbers<[1], [0], [0], [1], [0, 0, 1, 1], [], []>} : vector<8x32xf32>, vector<32x128xf32>, vector<8x128xf32> -> vector<8x128xf32>
    %cst_19 = arith.constant dense<0.000000e+00> : vector<8x128xf32>
    %36 = tpu.matmul %15, %11, %cst_19 {dimension_numbers = #tpu.dot_dimension_numbers<[1], [0], [0], [1], [0, 0, 1, 1], [], []>} : vector<8x32xf32>, vector<32x128xf32>, vector<8x128xf32> -> vector<8x128xf32>
    %37 = arith.addf %35, %36 : vector<8x128xf32>
    %38 = arith.addf %37, %14 : vector<8x128xf32>
    %39 = vector.extract_strided_slice %38 {offsets = [0, 0], sizes = [8, 96], strides = [1, 1]} : vector<8x128xf32> to vector<8x96xf32>
    %40 = arith.negf %39 : vector<8x96xf32>
    %41 = math.exp %40 : vector<8x96xf32>
    %cst_20 = arith.constant 1.000000e+00 : f32
    %42 = vector.broadcast %cst_20 : f32 to vector<8x96xf32>
    %43 = arith.addf %42, %41 : vector<8x96xf32>
    %44 = arith.divf %42, %43 : vector<8x96xf32>
    %45 = vector.extract_strided_slice %38 {offsets = [0, 96], sizes = [8, 32], strides = [1, 1]} : vector<8x128xf32> to vector<8x32xf32>
    %46 = math.tanh %45 : vector<8x32xf32>
    %47 = vector.extract_strided_slice %44 {offsets = [0, 0], sizes = [8, 32], strides = [1, 1]} : vector<8x96xf32> to vector<8x32xf32>
    %48 = vector.extract_strided_slice %44 {offsets = [0, 32], sizes = [8, 32], strides = [1, 1]} : vector<8x96xf32> to vector<8x32xf32>
    %49 = vector.extract_strided_slice %44 {offsets = [0, 64], sizes = [8, 32], strides = [1, 1]} : vector<8x96xf32> to vector<8x32xf32>
    %50 = arith.mulf %48, %15 : vector<8x32xf32>
    %51 = arith.mulf %47, %46 : vector<8x32xf32>
    %52 = arith.addf %50, %51 : vector<8x32xf32>
    %53 = math.tanh %52 : vector<8x32xf32>
    %54 = arith.mulf %49, %53 : vector<8x32xf32>
    %c1 = arith.constant 1 : index
    %c0_21 = arith.constant 0 : index
    %55 = tpu.strided_load %arg8[%c1, %c0_21] {strides = array<i32: 8, 1>} : memref<64x128xf32, #tpu.memory_space<vmem>>, vector<8x128xf32>
    %cst_22 = arith.constant dense<0.000000e+00> : vector<8x128xf32>
    %56 = tpu.matmul %34, %8, %cst_22 {dimension_numbers = #tpu.dot_dimension_numbers<[1], [0], [0], [1], [0, 0, 1, 1], [], []>} : vector<8x32xf32>, vector<32x128xf32>, vector<8x128xf32> -> vector<8x128xf32>
    %57 = arith.addf %55, %56 : vector<8x128xf32>
    %58 = vector.extract_strided_slice %57 {offsets = [0, 0], sizes = [8, 96], strides = [1, 1]} : vector<8x128xf32> to vector<8x96xf32>
    %59 = arith.negf %58 : vector<8x96xf32>
    %60 = math.exp %59 : vector<8x96xf32>
    %cst_23 = arith.constant 1.000000e+00 : f32
    %61 = vector.broadcast %cst_23 : f32 to vector<8x96xf32>
    %62 = arith.addf %61, %60 : vector<8x96xf32>
    %63 = arith.divf %61, %62 : vector<8x96xf32>
    %64 = vector.extract_strided_slice %57 {offsets = [0, 96], sizes = [8, 32], strides = [1, 1]} : vector<8x128xf32> to vector<8x32xf32>
    %65 = math.tanh %64 : vector<8x32xf32>
    %66 = vector.extract_strided_slice %63 {offsets = [0, 0], sizes = [8, 32], strides = [1, 1]} : vector<8x96xf32> to vector<8x32xf32>
    %67 = vector.extract_strided_slice %63 {offsets = [0, 32], sizes = [8, 32], strides = [1, 1]} : vector<8x96xf32> to vector<8x32xf32>
    %68 = vector.extract_strided_slice %63 {offsets = [0, 64], sizes = [8, 32], strides = [1, 1]} : vector<8x96xf32> to vector<8x32xf32>
    %69 = arith.mulf %67, %32 : vector<8x32xf32>
    %70 = arith.mulf %66, %65 : vector<8x32xf32>
    %71 = arith.addf %69, %70 : vector<8x32xf32>
    %72 = math.tanh %71 : vector<8x32xf32>
    %73 = arith.mulf %68, %72 : vector<8x32xf32>
    %cst_24 = arith.constant dense<0.000000e+00> : vector<8x128xf32>
    %74 = tpu.matmul %73, %10, %cst_24 {dimension_numbers = #tpu.dot_dimension_numbers<[1], [0], [0], [1], [0, 0, 1, 1], [], []>} : vector<8x32xf32>, vector<32x128xf32>, vector<8x128xf32> -> vector<8x128xf32>
    %cst_25 = arith.constant dense<0.000000e+00> : vector<8x128xf32>
    %75 = tpu.matmul %54, %11, %cst_25 {dimension_numbers = #tpu.dot_dimension_numbers<[1], [0], [0], [1], [0, 0, 1, 1], [], []>} : vector<8x32xf32>, vector<32x128xf32>, vector<8x128xf32> -> vector<8x128xf32>
    %76 = arith.addf %74, %75 : vector<8x128xf32>
    %77 = arith.addf %76, %14 : vector<8x128xf32>
    %78 = vector.extract_strided_slice %77 {offsets = [0, 0], sizes = [8, 96], strides = [1, 1]} : vector<8x128xf32> to vector<8x96xf32>
    %79 = arith.negf %78 : vector<8x96xf32>
    %80 = math.exp %79 : vector<8x96xf32>
    %cst_26 = arith.constant 1.000000e+00 : f32
    %81 = vector.broadcast %cst_26 : f32 to vector<8x96xf32>
    %82 = arith.addf %81, %80 : vector<8x96xf32>
    %83 = arith.divf %81, %82 : vector<8x96xf32>
    %84 = vector.extract_strided_slice %77 {offsets = [0, 96], sizes = [8, 32], strides = [1, 1]} : vector<8x128xf32> to vector<8x32xf32>
    %85 = math.tanh %84 : vector<8x32xf32>
    %86 = vector.extract_strided_slice %83 {offsets = [0, 0], sizes = [8, 32], strides = [1, 1]} : vector<8x96xf32> to vector<8x32xf32>
    %87 = vector.extract_strided_slice %83 {offsets = [0, 32], sizes = [8, 32], strides = [1, 1]} : vector<8x96xf32> to vector<8x32xf32>
    %88 = vector.extract_strided_slice %83 {offsets = [0, 64], sizes = [8, 32], strides = [1, 1]} : vector<8x96xf32> to vector<8x32xf32>
    %89 = arith.mulf %87, %52 : vector<8x32xf32>
    %90 = arith.mulf %86, %85 : vector<8x32xf32>
    %91 = arith.addf %89, %90 : vector<8x32xf32>
    %92 = math.tanh %91 : vector<8x32xf32>
    %93 = arith.mulf %88, %92 : vector<8x32xf32>
    %c2 = arith.constant 2 : index
    %c0_27 = arith.constant 0 : index
    %94 = tpu.strided_load %arg8[%c2, %c0_27] {strides = array<i32: 8, 1>} : memref<64x128xf32, #tpu.memory_space<vmem>>, vector<8x128xf32>
    %cst_28 = arith.constant dense<0.000000e+00> : vector<8x128xf32>
    %95 = tpu.matmul %73, %8, %cst_28 {dimension_numbers = #tpu.dot_dimension_numbers<[1], [0], [0], [1], [0, 0, 1, 1], [], []>} : vector<8x32xf32>, vector<32x128xf32>, vector<8x128xf32> -> vector<8x128xf32>
    %96 = arith.addf %94, %95 : vector<8x128xf32>
    %97 = vector.extract_strided_slice %96 {offsets = [0, 0], sizes = [8, 96], strides = [1, 1]} : vector<8x128xf32> to vector<8x96xf32>
    %98 = arith.negf %97 : vector<8x96xf32>
    %99 = math.exp %98 : vector<8x96xf32>
    %cst_29 = arith.constant 1.000000e+00 : f32
    %100 = vector.broadcast %cst_29 : f32 to vector<8x96xf32>
    %101 = arith.addf %100, %99 : vector<8x96xf32>
    %102 = arith.divf %100, %101 : vector<8x96xf32>
    %103 = vector.extract_strided_slice %96 {offsets = [0, 96], sizes = [8, 32], strides = [1, 1]} : vector<8x128xf32> to vector<8x32xf32>
    %104 = math.tanh %103 : vector<8x32xf32>
    %105 = vector.extract_strided_slice %102 {offsets = [0, 0], sizes = [8, 32], strides = [1, 1]} : vector<8x96xf32> to vector<8x32xf32>
    %106 = vector.extract_strided_slice %102 {offsets = [0, 32], sizes = [8, 32], strides = [1, 1]} : vector<8x96xf32> to vector<8x32xf32>
    %107 = vector.extract_strided_slice %102 {offsets = [0, 64], sizes = [8, 32], strides = [1, 1]} : vector<8x96xf32> to vector<8x32xf32>
    %108 = arith.mulf %106, %71 : vector<8x32xf32>
    %109 = arith.mulf %105, %104 : vector<8x32xf32>
    %110 = arith.addf %108, %109 : vector<8x32xf32>
    %111 = math.tanh %110 : vector<8x32xf32>
    %112 = arith.mulf %107, %111 : vector<8x32xf32>
    %cst_30 = arith.constant dense<0.000000e+00> : vector<8x128xf32>
    %113 = tpu.matmul %112, %10, %cst_30 {dimension_numbers = #tpu.dot_dimension_numbers<[1], [0], [0], [1], [0, 0, 1, 1], [], []>} : vector<8x32xf32>, vector<32x128xf32>, vector<8x128xf32> -> vector<8x128xf32>
    %cst_31 = arith.constant dense<0.000000e+00> : vector<8x128xf32>
    %114 = tpu.matmul %93, %11, %cst_31 {dimension_numbers = #tpu.dot_dimension_numbers<[1], [0], [0], [1], [0, 0, 1, 1], [], []>} : vector<8x32xf32>, vector<32x128xf32>, vector<8x128xf32> -> vector<8x128xf32>
    %115 = arith.addf %113, %114 : vector<8x128xf32>
    %116 = arith.addf %115, %14 : vector<8x128xf32>
    %117 = vector.extract_strided_slice %116 {offsets = [0, 0], sizes = [8, 96], strides = [1, 1]} : vector<8x128xf32> to vector<8x96xf32>
    %118 = arith.negf %117 : vector<8x96xf32>
    %119 = math.exp %118 : vector<8x96xf32>
    %cst_32 = arith.constant 1.000000e+00 : f32
    %120 = vector.broadcast %cst_32 : f32 to vector<8x96xf32>
    %121 = arith.addf %120, %119 : vector<8x96xf32>
    %122 = arith.divf %120, %121 : vector<8x96xf32>
    %123 = vector.extract_strided_slice %116 {offsets = [0, 96], sizes = [8, 32], strides = [1, 1]} : vector<8x128xf32> to vector<8x32xf32>
    %124 = math.tanh %123 : vector<8x32xf32>
    %125 = vector.extract_strided_slice %122 {offsets = [0, 0], sizes = [8, 32], strides = [1, 1]} : vector<8x96xf32> to vector<8x32xf32>
    %126 = vector.extract_strided_slice %122 {offsets = [0, 32], sizes = [8, 32], strides = [1, 1]} : vector<8x96xf32> to vector<8x32xf32>
    %127 = vector.extract_strided_slice %122 {offsets = [0, 64], sizes = [8, 32], strides = [1, 1]} : vector<8x96xf32> to vector<8x32xf32>
    %128 = arith.mulf %126, %91 : vector<8x32xf32>
    %129 = arith.mulf %125, %124 : vector<8x32xf32>
    %130 = arith.addf %128, %129 : vector<8x32xf32>
    %131 = math.tanh %130 : vector<8x32xf32>
    %132 = arith.mulf %127, %131 : vector<8x32xf32>
    %c3 = arith.constant 3 : index
    %c0_33 = arith.constant 0 : index
    %133 = tpu.strided_load %arg8[%c3, %c0_33] {strides = array<i32: 8, 1>} : memref<64x128xf32, #tpu.memory_space<vmem>>, vector<8x128xf32>
    %cst_34 = arith.constant dense<0.000000e+00> : vector<8x128xf32>
    %134 = tpu.matmul %112, %8, %cst_34 {dimension_numbers = #tpu.dot_dimension_numbers<[1], [0], [0], [1], [0, 0, 1, 1], [], []>} : vector<8x32xf32>, vector<32x128xf32>, vector<8x128xf32> -> vector<8x128xf32>
    %135 = arith.addf %133, %134 : vector<8x128xf32>
    %136 = vector.extract_strided_slice %135 {offsets = [0, 0], sizes = [8, 96], strides = [1, 1]} : vector<8x128xf32> to vector<8x96xf32>
    %137 = arith.negf %136 : vector<8x96xf32>
    %138 = math.exp %137 : vector<8x96xf32>
    %cst_35 = arith.constant 1.000000e+00 : f32
    %139 = vector.broadcast %cst_35 : f32 to vector<8x96xf32>
    %140 = arith.addf %139, %138 : vector<8x96xf32>
    %141 = arith.divf %139, %140 : vector<8x96xf32>
    %142 = vector.extract_strided_slice %135 {offsets = [0, 96], sizes = [8, 32], strides = [1, 1]} : vector<8x128xf32> to vector<8x32xf32>
    %143 = math.tanh %142 : vector<8x32xf32>
    %144 = vector.extract_strided_slice %141 {offsets = [0, 0], sizes = [8, 32], strides = [1, 1]} : vector<8x96xf32> to vector<8x32xf32>
    %145 = vector.extract_strided_slice %141 {offsets = [0, 32], sizes = [8, 32], strides = [1, 1]} : vector<8x96xf32> to vector<8x32xf32>
    %146 = vector.extract_strided_slice %141 {offsets = [0, 64], sizes = [8, 32], strides = [1, 1]} : vector<8x96xf32> to vector<8x32xf32>
    %147 = arith.mulf %145, %110 : vector<8x32xf32>
    %148 = arith.mulf %144, %143 : vector<8x32xf32>
    %149 = arith.addf %147, %148 : vector<8x32xf32>
    %150 = math.tanh %149 : vector<8x32xf32>
    %151 = arith.mulf %146, %150 : vector<8x32xf32>
    %cst_36 = arith.constant dense<0.000000e+00> : vector<8x128xf32>
    %152 = tpu.matmul %151, %10, %cst_36 {dimension_numbers = #tpu.dot_dimension_numbers<[1], [0], [0], [1], [0, 0, 1, 1], [], []>} : vector<8x32xf32>, vector<32x128xf32>, vector<8x128xf32> -> vector<8x128xf32>
    %cst_37 = arith.constant dense<0.000000e+00> : vector<8x128xf32>
    %153 = tpu.matmul %132, %11, %cst_37 {dimension_numbers = #tpu.dot_dimension_numbers<[1], [0], [0], [1], [0, 0, 1, 1], [], []>} : vector<8x32xf32>, vector<32x128xf32>, vector<8x128xf32> -> vector<8x128xf32>
    %154 = arith.addf %152, %153 : vector<8x128xf32>
    %155 = arith.addf %154, %14 : vector<8x128xf32>
    %156 = vector.extract_strided_slice %155 {offsets = [0, 0], sizes = [8, 96], strides = [1, 1]} : vector<8x128xf32> to vector<8x96xf32>
    %157 = arith.negf %156 : vector<8x96xf32>
    %158 = math.exp %157 : vector<8x96xf32>
    %cst_38 = arith.constant 1.000000e+00 : f32
    %159 = vector.broadcast %cst_38 : f32 to vector<8x96xf32>
    %160 = arith.addf %159, %158 : vector<8x96xf32>
    %161 = arith.divf %159, %160 : vector<8x96xf32>
    %162 = vector.extract_strided_slice %155 {offsets = [0, 96], sizes = [8, 32], strides = [1, 1]} : vector<8x128xf32> to vector<8x32xf32>
    %163 = math.tanh %162 : vector<8x32xf32>
    %164 = vector.extract_strided_slice %161 {offsets = [0, 0], sizes = [8, 32], strides = [1, 1]} : vector<8x96xf32> to vector<8x32xf32>
    %165 = vector.extract_strided_slice %161 {offsets = [0, 32], sizes = [8, 32], strides = [1, 1]} : vector<8x96xf32> to vector<8x32xf32>
    %166 = vector.extract_strided_slice %161 {offsets = [0, 64], sizes = [8, 32], strides = [1, 1]} : vector<8x96xf32> to vector<8x32xf32>
    %167 = arith.mulf %165, %130 : vector<8x32xf32>
    %168 = arith.mulf %164, %163 : vector<8x32xf32>
    %169 = arith.addf %167, %168 : vector<8x32xf32>
    %170 = math.tanh %169 : vector<8x32xf32>
    %171 = arith.mulf %166, %170 : vector<8x32xf32>
    %c4 = arith.constant 4 : index
    %c0_39 = arith.constant 0 : index
    %172 = tpu.strided_load %arg8[%c4, %c0_39] {strides = array<i32: 8, 1>} : memref<64x128xf32, #tpu.memory_space<vmem>>, vector<8x128xf32>
    %cst_40 = arith.constant dense<0.000000e+00> : vector<8x128xf32>
    %173 = tpu.matmul %151, %8, %cst_40 {dimension_numbers = #tpu.dot_dimension_numbers<[1], [0], [0], [1], [0, 0, 1, 1], [], []>} : vector<8x32xf32>, vector<32x128xf32>, vector<8x128xf32> -> vector<8x128xf32>
    %174 = arith.addf %172, %173 : vector<8x128xf32>
    %175 = vector.extract_strided_slice %174 {offsets = [0, 0], sizes = [8, 96], strides = [1, 1]} : vector<8x128xf32> to vector<8x96xf32>
    %176 = arith.negf %175 : vector<8x96xf32>
    %177 = math.exp %176 : vector<8x96xf32>
    %cst_41 = arith.constant 1.000000e+00 : f32
    %178 = vector.broadcast %cst_41 : f32 to vector<8x96xf32>
    %179 = arith.addf %178, %177 : vector<8x96xf32>
    %180 = arith.divf %178, %179 : vector<8x96xf32>
    %181 = vector.extract_strided_slice %174 {offsets = [0, 96], sizes = [8, 32], strides = [1, 1]} : vector<8x128xf32> to vector<8x32xf32>
    %182 = math.tanh %181 : vector<8x32xf32>
    %183 = vector.extract_strided_slice %180 {offsets = [0, 0], sizes = [8, 32], strides = [1, 1]} : vector<8x96xf32> to vector<8x32xf32>
    %184 = vector.extract_strided_slice %180 {offsets = [0, 32], sizes = [8, 32], strides = [1, 1]} : vector<8x96xf32> to vector<8x32xf32>
    %185 = vector.extract_strided_slice %180 {offsets = [0, 64], sizes = [8, 32], strides = [1, 1]} : vector<8x96xf32> to vector<8x32xf32>
    %186 = arith.mulf %184, %149 : vector<8x32xf32>
    %187 = arith.mulf %183, %182 : vector<8x32xf32>
    %188 = arith.addf %186, %187 : vector<8x32xf32>
    %189 = math.tanh %188 : vector<8x32xf32>
    %190 = arith.mulf %185, %189 : vector<8x32xf32>
    %cst_42 = arith.constant dense<0.000000e+00> : vector<8x128xf32>
    %191 = tpu.matmul %190, %10, %cst_42 {dimension_numbers = #tpu.dot_dimension_numbers<[1], [0], [0], [1], [0, 0, 1, 1], [], []>} : vector<8x32xf32>, vector<32x128xf32>, vector<8x128xf32> -> vector<8x128xf32>
    %cst_43 = arith.constant dense<0.000000e+00> : vector<8x128xf32>
    %192 = tpu.matmul %171, %11, %cst_43 {dimension_numbers = #tpu.dot_dimension_numbers<[1], [0], [0], [1], [0, 0, 1, 1], [], []>} : vector<8x32xf32>, vector<32x128xf32>, vector<8x128xf32> -> vector<8x128xf32>
    %193 = arith.addf %191, %192 : vector<8x128xf32>
    %194 = arith.addf %193, %14 : vector<8x128xf32>
    %195 = vector.extract_strided_slice %194 {offsets = [0, 0], sizes = [8, 96], strides = [1, 1]} : vector<8x128xf32> to vector<8x96xf32>
    %196 = arith.negf %195 : vector<8x96xf32>
    %197 = math.exp %196 : vector<8x96xf32>
    %cst_44 = arith.constant 1.000000e+00 : f32
    %198 = vector.broadcast %cst_44 : f32 to vector<8x96xf32>
    %199 = arith.addf %198, %197 : vector<8x96xf32>
    %200 = arith.divf %198, %199 : vector<8x96xf32>
    %201 = vector.extract_strided_slice %194 {offsets = [0, 96], sizes = [8, 32], strides = [1, 1]} : vector<8x128xf32> to vector<8x32xf32>
    %202 = math.tanh %201 : vector<8x32xf32>
    %203 = vector.extract_strided_slice %200 {offsets = [0, 0], sizes = [8, 32], strides = [1, 1]} : vector<8x96xf32> to vector<8x32xf32>
    %204 = vector.extract_strided_slice %200 {offsets = [0, 32], sizes = [8, 32], strides = [1, 1]} : vector<8x96xf32> to vector<8x32xf32>
    %205 = vector.extract_strided_slice %200 {offsets = [0, 64], sizes = [8, 32], strides = [1, 1]} : vector<8x96xf32> to vector<8x32xf32>
    %206 = arith.mulf %204, %169 : vector<8x32xf32>
    %207 = arith.mulf %203, %202 : vector<8x32xf32>
    %208 = arith.addf %206, %207 : vector<8x32xf32>
    %209 = math.tanh %208 : vector<8x32xf32>
    %210 = arith.mulf %205, %209 : vector<8x32xf32>
    %c5 = arith.constant 5 : index
    %c0_45 = arith.constant 0 : index
    %211 = tpu.strided_load %arg8[%c5, %c0_45] {strides = array<i32: 8, 1>} : memref<64x128xf32, #tpu.memory_space<vmem>>, vector<8x128xf32>
    %cst_46 = arith.constant dense<0.000000e+00> : vector<8x128xf32>
    %212 = tpu.matmul %190, %8, %cst_46 {dimension_numbers = #tpu.dot_dimension_numbers<[1], [0], [0], [1], [0, 0, 1, 1], [], []>} : vector<8x32xf32>, vector<32x128xf32>, vector<8x128xf32> -> vector<8x128xf32>
    %213 = arith.addf %211, %212 : vector<8x128xf32>
    %214 = vector.extract_strided_slice %213 {offsets = [0, 0], sizes = [8, 96], strides = [1, 1]} : vector<8x128xf32> to vector<8x96xf32>
    %215 = arith.negf %214 : vector<8x96xf32>
    %216 = math.exp %215 : vector<8x96xf32>
    %cst_47 = arith.constant 1.000000e+00 : f32
    %217 = vector.broadcast %cst_47 : f32 to vector<8x96xf32>
    %218 = arith.addf %217, %216 : vector<8x96xf32>
    %219 = arith.divf %217, %218 : vector<8x96xf32>
    %220 = vector.extract_strided_slice %213 {offsets = [0, 96], sizes = [8, 32], strides = [1, 1]} : vector<8x128xf32> to vector<8x32xf32>
    %221 = math.tanh %220 : vector<8x32xf32>
    %222 = vector.extract_strided_slice %219 {offsets = [0, 0], sizes = [8, 32], strides = [1, 1]} : vector<8x96xf32> to vector<8x32xf32>
    %223 = vector.extract_strided_slice %219 {offsets = [0, 32], sizes = [8, 32], strides = [1, 1]} : vector<8x96xf32> to vector<8x32xf32>
    %224 = vector.extract_strided_slice %219 {offsets = [0, 64], sizes = [8, 32], strides = [1, 1]} : vector<8x96xf32> to vector<8x32xf32>
    %225 = arith.mulf %223, %188 : vector<8x32xf32>
    %226 = arith.mulf %222, %221 : vector<8x32xf32>
    %227 = arith.addf %225, %226 : vector<8x32xf32>
    %228 = math.tanh %227 : vector<8x32xf32>
    %229 = arith.mulf %224, %228 : vector<8x32xf32>
    %cst_48 = arith.constant dense<0.000000e+00> : vector<8x128xf32>
    %230 = tpu.matmul %229, %10, %cst_48 {dimension_numbers = #tpu.dot_dimension_numbers<[1], [0], [0], [1], [0, 0, 1, 1], [], []>} : vector<8x32xf32>, vector<32x128xf32>, vector<8x128xf32> -> vector<8x128xf32>
    %cst_49 = arith.constant dense<0.000000e+00> : vector<8x128xf32>
    %231 = tpu.matmul %210, %11, %cst_49 {dimension_numbers = #tpu.dot_dimension_numbers<[1], [0], [0], [1], [0, 0, 1, 1], [], []>} : vector<8x32xf32>, vector<32x128xf32>, vector<8x128xf32> -> vector<8x128xf32>
    %232 = arith.addf %230, %231 : vector<8x128xf32>
    %233 = arith.addf %232, %14 : vector<8x128xf32>
    %234 = vector.extract_strided_slice %233 {offsets = [0, 0], sizes = [8, 96], strides = [1, 1]} : vector<8x128xf32> to vector<8x96xf32>
    %235 = arith.negf %234 : vector<8x96xf32>
    %236 = math.exp %235 : vector<8x96xf32>
    %cst_50 = arith.constant 1.000000e+00 : f32
    %237 = vector.broadcast %cst_50 : f32 to vector<8x96xf32>
    %238 = arith.addf %237, %236 : vector<8x96xf32>
    %239 = arith.divf %237, %238 : vector<8x96xf32>
    %240 = vector.extract_strided_slice %233 {offsets = [0, 96], sizes = [8, 32], strides = [1, 1]} : vector<8x128xf32> to vector<8x32xf32>
    %241 = math.tanh %240 : vector<8x32xf32>
    %242 = vector.extract_strided_slice %239 {offsets = [0, 0], sizes = [8, 32], strides = [1, 1]} : vector<8x96xf32> to vector<8x32xf32>
    %243 = vector.extract_strided_slice %239 {offsets = [0, 32], sizes = [8, 32], strides = [1, 1]} : vector<8x96xf32> to vector<8x32xf32>
    %244 = vector.extract_strided_slice %239 {offsets = [0, 64], sizes = [8, 32], strides = [1, 1]} : vector<8x96xf32> to vector<8x32xf32>
    %245 = arith.mulf %243, %208 : vector<8x32xf32>
    %246 = arith.mulf %242, %241 : vector<8x32xf32>
    %247 = arith.addf %245, %246 : vector<8x32xf32>
    %248 = math.tanh %247 : vector<8x32xf32>
    %249 = arith.mulf %244, %248 : vector<8x32xf32>
    %c6 = arith.constant 6 : index
    %c0_51 = arith.constant 0 : index
    %250 = tpu.strided_load %arg8[%c6, %c0_51] {strides = array<i32: 8, 1>} : memref<64x128xf32, #tpu.memory_space<vmem>>, vector<8x128xf32>
    %cst_52 = arith.constant dense<0.000000e+00> : vector<8x128xf32>
    %251 = tpu.matmul %229, %8, %cst_52 {dimension_numbers = #tpu.dot_dimension_numbers<[1], [0], [0], [1], [0, 0, 1, 1], [], []>} : vector<8x32xf32>, vector<32x128xf32>, vector<8x128xf32> -> vector<8x128xf32>
    %252 = arith.addf %250, %251 : vector<8x128xf32>
    %253 = vector.extract_strided_slice %252 {offsets = [0, 0], sizes = [8, 96], strides = [1, 1]} : vector<8x128xf32> to vector<8x96xf32>
    %254 = arith.negf %253 : vector<8x96xf32>
    %255 = math.exp %254 : vector<8x96xf32>
    %cst_53 = arith.constant 1.000000e+00 : f32
    %256 = vector.broadcast %cst_53 : f32 to vector<8x96xf32>
    %257 = arith.addf %256, %255 : vector<8x96xf32>
    %258 = arith.divf %256, %257 : vector<8x96xf32>
    %259 = vector.extract_strided_slice %252 {offsets = [0, 96], sizes = [8, 32], strides = [1, 1]} : vector<8x128xf32> to vector<8x32xf32>
    %260 = math.tanh %259 : vector<8x32xf32>
    %261 = vector.extract_strided_slice %258 {offsets = [0, 0], sizes = [8, 32], strides = [1, 1]} : vector<8x96xf32> to vector<8x32xf32>
    %262 = vector.extract_strided_slice %258 {offsets = [0, 32], sizes = [8, 32], strides = [1, 1]} : vector<8x96xf32> to vector<8x32xf32>
    %263 = vector.extract_strided_slice %258 {offsets = [0, 64], sizes = [8, 32], strides = [1, 1]} : vector<8x96xf32> to vector<8x32xf32>
    %264 = arith.mulf %262, %227 : vector<8x32xf32>
    %265 = arith.mulf %261, %260 : vector<8x32xf32>
    %266 = arith.addf %264, %265 : vector<8x32xf32>
    %267 = math.tanh %266 : vector<8x32xf32>
    %268 = arith.mulf %263, %267 : vector<8x32xf32>
    %cst_54 = arith.constant dense<0.000000e+00> : vector<8x128xf32>
    %269 = tpu.matmul %268, %10, %cst_54 {dimension_numbers = #tpu.dot_dimension_numbers<[1], [0], [0], [1], [0, 0, 1, 1], [], []>} : vector<8x32xf32>, vector<32x128xf32>, vector<8x128xf32> -> vector<8x128xf32>
    %cst_55 = arith.constant dense<0.000000e+00> : vector<8x128xf32>
    %270 = tpu.matmul %249, %11, %cst_55 {dimension_numbers = #tpu.dot_dimension_numbers<[1], [0], [0], [1], [0, 0, 1, 1], [], []>} : vector<8x32xf32>, vector<32x128xf32>, vector<8x128xf32> -> vector<8x128xf32>
    %271 = arith.addf %269, %270 : vector<8x128xf32>
    %272 = arith.addf %271, %14 : vector<8x128xf32>
    %273 = vector.extract_strided_slice %272 {offsets = [0, 0], sizes = [8, 96], strides = [1, 1]} : vector<8x128xf32> to vector<8x96xf32>
    %274 = arith.negf %273 : vector<8x96xf32>
    %275 = math.exp %274 : vector<8x96xf32>
    %cst_56 = arith.constant 1.000000e+00 : f32
    %276 = vector.broadcast %cst_56 : f32 to vector<8x96xf32>
    %277 = arith.addf %276, %275 : vector<8x96xf32>
    %278 = arith.divf %276, %277 : vector<8x96xf32>
    %279 = vector.extract_strided_slice %272 {offsets = [0, 96], sizes = [8, 32], strides = [1, 1]} : vector<8x128xf32> to vector<8x32xf32>
    %280 = math.tanh %279 : vector<8x32xf32>
    %281 = vector.extract_strided_slice %278 {offsets = [0, 0], sizes = [8, 32], strides = [1, 1]} : vector<8x96xf32> to vector<8x32xf32>
    %282 = vector.extract_strided_slice %278 {offsets = [0, 32], sizes = [8, 32], strides = [1, 1]} : vector<8x96xf32> to vector<8x32xf32>
    %283 = vector.extract_strided_slice %278 {offsets = [0, 64], sizes = [8, 32], strides = [1, 1]} : vector<8x96xf32> to vector<8x32xf32>
    %284 = arith.mulf %282, %247 : vector<8x32xf32>
    %285 = arith.mulf %281, %280 : vector<8x32xf32>
    %286 = arith.addf %284, %285 : vector<8x32xf32>
    %287 = math.tanh %286 : vector<8x32xf32>
    %288 = arith.mulf %283, %287 : vector<8x32xf32>
    %c7 = arith.constant 7 : index
    %c0_57 = arith.constant 0 : index
    %289 = tpu.strided_load %arg8[%c7, %c0_57] {strides = array<i32: 8, 1>} : memref<64x128xf32, #tpu.memory_space<vmem>>, vector<8x128xf32>
    %cst_58 = arith.constant dense<0.000000e+00> : vector<8x128xf32>
    %290 = tpu.matmul %268, %8, %cst_58 {dimension_numbers = #tpu.dot_dimension_numbers<[1], [0], [0], [1], [0, 0, 1, 1], [], []>} : vector<8x32xf32>, vector<32x128xf32>, vector<8x128xf32> -> vector<8x128xf32>
    %291 = arith.addf %289, %290 : vector<8x128xf32>
    %292 = vector.extract_strided_slice %291 {offsets = [0, 0], sizes = [8, 96], strides = [1, 1]} : vector<8x128xf32> to vector<8x96xf32>
    %293 = arith.negf %292 : vector<8x96xf32>
    %294 = math.exp %293 : vector<8x96xf32>
    %cst_59 = arith.constant 1.000000e+00 : f32
    %295 = vector.broadcast %cst_59 : f32 to vector<8x96xf32>
    %296 = arith.addf %295, %294 : vector<8x96xf32>
    %297 = arith.divf %295, %296 : vector<8x96xf32>
    %298 = vector.extract_strided_slice %291 {offsets = [0, 96], sizes = [8, 32], strides = [1, 1]} : vector<8x128xf32> to vector<8x32xf32>
    %299 = math.tanh %298 : vector<8x32xf32>
    %300 = vector.extract_strided_slice %297 {offsets = [0, 0], sizes = [8, 32], strides = [1, 1]} : vector<8x96xf32> to vector<8x32xf32>
    %301 = vector.extract_strided_slice %297 {offsets = [0, 32], sizes = [8, 32], strides = [1, 1]} : vector<8x96xf32> to vector<8x32xf32>
    %302 = vector.extract_strided_slice %297 {offsets = [0, 64], sizes = [8, 32], strides = [1, 1]} : vector<8x96xf32> to vector<8x32xf32>
    %303 = arith.mulf %301, %266 : vector<8x32xf32>
    %304 = arith.mulf %300, %299 : vector<8x32xf32>
    %305 = arith.addf %303, %304 : vector<8x32xf32>
    %306 = math.tanh %305 : vector<8x32xf32>
    %307 = arith.mulf %302, %306 : vector<8x32xf32>
    %cst_60 = arith.constant dense<0.000000e+00> : vector<8x128xf32>
    %308 = tpu.matmul %307, %10, %cst_60 {dimension_numbers = #tpu.dot_dimension_numbers<[1], [0], [0], [1], [0, 0, 1, 1], [], []>} : vector<8x32xf32>, vector<32x128xf32>, vector<8x128xf32> -> vector<8x128xf32>
    %cst_61 = arith.constant dense<0.000000e+00> : vector<8x128xf32>
    %309 = tpu.matmul %288, %11, %cst_61 {dimension_numbers = #tpu.dot_dimension_numbers<[1], [0], [0], [1], [0, 0, 1, 1], [], []>} : vector<8x32xf32>, vector<32x128xf32>, vector<8x128xf32> -> vector<8x128xf32>
    %310 = arith.addf %308, %309 : vector<8x128xf32>
    %311 = arith.addf %310, %14 : vector<8x128xf32>
    %312 = vector.extract_strided_slice %311 {offsets = [0, 0], sizes = [8, 96], strides = [1, 1]} : vector<8x128xf32> to vector<8x96xf32>
    %313 = arith.negf %312 : vector<8x96xf32>
    %314 = math.exp %313 : vector<8x96xf32>
    %cst_62 = arith.constant 1.000000e+00 : f32
    %315 = vector.broadcast %cst_62 : f32 to vector<8x96xf32>
    %316 = arith.addf %315, %314 : vector<8x96xf32>
    %317 = arith.divf %315, %316 : vector<8x96xf32>
    %318 = vector.extract_strided_slice %311 {offsets = [0, 96], sizes = [8, 32], strides = [1, 1]} : vector<8x128xf32> to vector<8x32xf32>
    %319 = math.tanh %318 : vector<8x32xf32>
    %320 = vector.extract_strided_slice %317 {offsets = [0, 0], sizes = [8, 32], strides = [1, 1]} : vector<8x96xf32> to vector<8x32xf32>
    %321 = vector.extract_strided_slice %317 {offsets = [0, 32], sizes = [8, 32], strides = [1, 1]} : vector<8x96xf32> to vector<8x32xf32>
    %322 = vector.extract_strided_slice %317 {offsets = [0, 64], sizes = [8, 32], strides = [1, 1]} : vector<8x96xf32> to vector<8x32xf32>
    %323 = arith.mulf %321, %286 : vector<8x32xf32>
    %324 = arith.mulf %320, %319 : vector<8x32xf32>
    %325 = arith.addf %323, %324 : vector<8x32xf32>
    %326 = math.tanh %325 : vector<8x32xf32>
    %327 = arith.mulf %322, %326 : vector<8x32xf32>
    %c0_63 = arith.constant 0 : index
    %c0_64 = arith.constant 0 : index
    %328 = vector.load %arg7[%c0_63, %c0_64] : memref<8x32xf32, #tpu.memory_space<vmem>>, vector<8x32xf32>
    tpu.vector_store %arg7[%c0_63, %c0_64], %327 {strides = array<i32>} : memref<8x32xf32, #tpu.memory_space<vmem>>, vector<8x32xf32>,
    return
  }
  func.func @transform_0(%arg0: i32) -> (i32, i32) {
    %c0_i32 = arith.constant 0 : i32
    %c0_i32_0 = arith.constant 0 : i32
    return %arg0, %c0_i32 : i32, i32
  }
  func.func @transform_1(%arg0: i32) -> (i32, i32) {
    %c0_i32 = arith.constant 0 : i32
    %c0_i32_0 = arith.constant 0 : i32
    %c0_i32_1 = arith.constant 0 : i32
    return %c0_i32, %c0_i32_0 : i32, i32
  }
  func.func @transform_2(%arg0: i32) -> (i32, i32) {
    %c0_i32 = arith.constant 0 : i32
    %c0_i32_0 = arith.constant 0 : i32
    %c0_i32_1 = arith.constant 0 : i32
    return %c0_i32, %c0_i32_0 : i32, i32
  }
  func.func @transform_3(%arg0: i32) -> (i32, i32) {
    %c0_i32 = arith.constant 0 : i32
    %c0_i32_0 = arith.constant 0 : i32
    %c0_i32_1 = arith.constant 0 : i32
    return %c0_i32, %c0_i32_0 : i32, i32
  }
  func.func @transform_4(%arg0: i32) -> (i32, i32) {
    %c0_i32 = arith.constant 0 : i32
    %c0_i32_0 = arith.constant 0 : i32
    %c0_i32_1 = arith.constant 0 : i32
    return %c0_i32, %c0_i32_0 : i32, i32
  }
  func.func @transform_5(%arg0: i32) -> (i32, i32) {
    %c0_i32 = arith.constant 0 : i32
    %c0_i32_0 = arith.constant 0 : i32
    %c0_i32_1 = arith.constant 0 : i32
    return %c0_i32, %c0_i32_0 : i32, i32
  }
  func.func @transform_6(%arg0: i32) -> (i32, i32) {
    %c0_i32 = arith.constant 0 : i32
    %c0_i32_0 = arith.constant 0 : i32
    return %arg0, %c0_i32 : i32, i32
  }
}

</mosaic_0001>

<bundles_post_ra>
// kernel: encoder_rnn_forward.1
= control target key start
LH: loop header
LB: loop body
LE: loop exit
PB: predicated region body
PF: predicated region fallthrough
CT: control target
= control target key end

     0   :  { %11 = vsyncpa [#allocation4], 0  ;;  %s6610_s0 = inlined_call_operand.vmem [shape: bf16[64,2048], index: 0, kind: input, shape index: {}]   ;;  %s6611_s1 = inlined_call_operand.vmem [shape: bf16[2048,128], index: 1, kind: input, shape index: {}]   ;;  %s6612_s2 = inlined_call_operand.hbm [shape: f32[32,128], index: 2, kind: input, shape index: {}]   ;;  %s6613_s3 = inlined_call_operand.vmem [shape: f32[1,128], index: 3, kind: input, shape index: {}]   ;;  %s6614_s4 = inlined_call_operand.hbm [shape: f32[64,128], index: 4, kind: input, shape index: {}]   ;;  %s6615_s5 = inlined_call_operand.vmem [shape: f32[1,128], index: 5, kind: input, shape index: {}]   ;;  %s6616_s6 = inlined_call_operand.vmem [shape: f32[8,32], index: 6, kind: output, shape index: {}]  }
   0x1   :  { %12 = vsyncpa [#allocation6], 0  ;;  %s5608_s21 = smov [#allocation3]   ;;  %s5560_s25 = scalar_lea.hbm %s6612_s2, 512 }
   0x2   :  { %s22_s22 = sshll.u32 %s5608_s21, 4  ;;  %p5561_p0 = scmp.ne.s32.totalorder %s6612_s2, %s5560_s25  ;;  %s23_s22 = int_to_ptr.vmem [resolvable:$true] %s22_s22 }
   0x3   :  { %p5564_p1 = scmp.lt.u32.totalorder %s5560_s25, %s6612_s2 }
   0x5   :  { %p5566_p2 = pnand %p5564_p1, %p5561_p0 }
   0x7   :  { %5569 = shalt.err (!%p5566_p2)
}
   0x8   :  { %s5570_s30 = scalar_lea.vmem %s23_s22, 512  ;;  %p5575_p4 = scmp.lt.s32.totalorder %s23_s22, %s23_s22 }
   0x9   :  { %p5571_p3 = scmp.ne.s32.totalorder %s23_s22, %s5570_s30  ;;  %p5576_p5 = scmp.lt.s32.totalorder %s5570_s30, %s5570_s30 }
   0xb   :  { %p5577_p6 = por %p5576_p5, %p5575_p4 }
   0xd   :  { %p5578_p7 = pnand %p5577_p6, %p5571_p3 }
   0xf   :  { %5581 = shalt.err (!%p5578_p7)
}
  0x10   :  { %s5609_s7 = smov 128   ;;  %s5610_s8 = smov 8  }
  0x11   :  { %28 = dma.hbm_to_vmem [thread:$0]  %s6612_s2, 512, %s23_s22, [#allocation4], %s5609_s7, %s5609_s7, %s5610_s8  }
  0x12   :  { %s5611_s11 = smov [#allocation5]   ;;  %s5582_s15 = scalar_lea.hbm %s6614_s4, 1024 }
  0x13   :  { %s36_s12 = sshll.u32 %s5611_s11, 4  ;;  %p5583_p8 = scmp.ne.s32.totalorder %s6614_s4, %s5582_s15  ;;  %s37_s12 = int_to_ptr.vmem [resolvable:$true] %s36_s12 }
  0x14   :  { %p5586_p9 = scmp.lt.u32.totalorder %s5582_s15, %s6614_s4 }
  0x16   :  { %p5588_p10 = pnand %p5586_p9, %p5583_p8 }
  0x18   :  { %5591 = shalt.err (!%p5588_p10)
}
  0x19   :  { %s5592_s20 = scalar_lea.vmem %s37_s12, 1024  ;;  %p5597_p12 = scmp.lt.s32.totalorder %s37_s12, %s37_s12 }
  0x1a   :  { %p5593_p11 = scmp.ne.s32.totalorder %s37_s12, %s5592_s20  ;;  %p5598_p13 = scmp.lt.s32.totalorder %s5592_s20, %s5592_s20 }
  0x1c   :  { %p5599_p0 = por %p5598_p13, %p5597_p12 }
  0x1e   :  { %p5600_p1 = pnand %p5599_p0, %p5593_p11 }
  0x20   :  { %5603 = shalt.err (!%p5600_p1)
}
  0x21   :  { %42 = dma.hbm_to_vmem [thread:$0]  %s6614_s4, 1024, %s37_s12, [#allocation6], %s5609_s7, %s5609_s7, %s5610_s8  }
  0x22   :  { %5604 = dma.done.wait [#allocation4], 512  }
  0x23   :  { %5605 = vsyncadd [#allocation4], 4294966784 }
  0x24   :  { %5606 = dma.done.wait [#allocation6], 1024  }
  0x25   :  { %5607 = vsyncadd [#allocation6], 4294966272  ;;  %v5304_v0 = vld [vmem:[%s6611_s1 + $0x40] sm:$0xff]   ;;  %v5308_v4 = vld [vmem:[%s6611_s1 + $0x48] sm:$0xff]   ;;  %vm5613_vm0 = vmmov 0   ;;  %s5616_s17 = smov 64  }
  0x26   :  { %v5305_v1 = vld [vmem:[%s6611_s1 + $0xc0] sm:$0xff]   ;;  %4447 = vmatprep.subr.bf16.mxu0 %v5304_v0  ;;  %v5309_v5 = vld [vmem:[%s6611_s1 + $0xc8] sm:$0xff]   ;;  %v5312_v8 = vld [vmem:[%s6611_s1 + $0x50] sm:$0xff]   ;;  %vm2017_vm1 = vcmask 261120  }
  0x27   :  { %v5306_v2 = vld [vmem:[%s6611_s1] sm:$0xff]   ;;  %4487 = vmatprep.subr.bf16.mxu1 %v5305_v1  ;;  %v5310_v6 = vld [vmem:[%s6611_s1 + $0x8] sm:$0xff]   ;;  %v5313_v9 = vld [vmem:[%s6611_s1 + $0xd0] sm:$0xff]  }
  0x28   :  { %v5307_v3 = vld [vmem:[%s6611_s1 + $0x80] sm:$0xff]   ;;  %4448 = vmatpush3.bf16.msra.mxu0 %v5306_v2  ;;  %v5311_v7 = vld [vmem:[%s6611_s1 + $0x88] sm:$0xff]   ;;  %v5314_v10 = vld [vmem:[%s6611_s1 + $0x10] sm:$0xff]  }
  0x29   :  { %4488 = vmatpush3.bf16.msra.mxu1 %v5307_v3  ;;  %4449 = vmatprep.subr.bf16.mxu0 %v5308_v4  ;;  %v5315_v11 = vld [vmem:[%s6611_s1 + $0x90] sm:$0xff]   ;;  %v5316_v12 = vld [vmem:[%s6611_s1 + $0x58] sm:$0xff]   ;;  %v5320_v16 = vld [vmem:[%s6611_s1 + $0x60] sm:$0xff]  }
  0x2a   :  { %4489 = vmatprep.subr.bf16.mxu1 %v5309_v5  ;;  %v5317_v13 = vld [vmem:[%s6611_s1 + $0xd8] sm:$0xff]   ;;  %v5321_v17 = vld [vmem:[%s6611_s1 + $0xe0] sm:$0xff]   ;;  %v5324_v20 = vld [vmem:[%s6611_s1 + $0x68] sm:$0xff]  }
  0x2b   :  { %v5318_v14 = vld [vmem:[%s6611_s1 + $0x18] sm:$0xff]   ;;  %v5322_v18 = vld [vmem:[%s6611_s1 + $0x20] sm:$0xff]   ;;  %v5325_v21 = vld [vmem:[%s6611_s1 + $0xe8] sm:$0xff]  }
  0x2c   :  { %4450 = vmatpush3.bf16.msra.mxu0 %v5310_v6  ;;  %v5319_v15 = vld [vmem:[%s6611_s1 + $0x98] sm:$0xff]   ;;  %v5323_v19 = vld [vmem:[%s6611_s1 + $0xa0] sm:$0xff]   ;;  %v5326_v22 = vld [vmem:[%s6611_s1 + $0x28] sm:$0xff]  }
  0x2d   :  { %4490 = vmatpush3.bf16.msra.mxu1 %v5311_v7  ;;  %4451 = vmatprep.subr.bf16.mxu0 %v5312_v8  ;;  %v5327_v23 = vld [vmem:[%s6611_s1 + $0xa8] sm:$0xff]   ;;  %v5328_v24 = vld [vmem:[%s6611_s1 + $0x70] sm:$0xff]   ;;  %v5332_v28 = vld [vmem:[%s6611_s1 + $0x78] sm:$0xff]  }
  0x2e   :  { %4491 = vmatprep.subr.bf16.mxu1 %v5313_v9  ;;  %v5329_v25 = vld [vmem:[%s6611_s1 + $0xf0] sm:$0xff]   ;;  %v5333_v29 = vld [vmem:[%s6611_s1 + $0xf8] sm:$0xff]   ;;  %v52_v32 = vld [vmem:[%s6610_s0] sm:$0xff] }
  0x2f   :  { %v5330_v26 = vld [vmem:[%s6611_s1 + $0x30] sm:$0xff]   ;;  %v5334_v30 = vld [vmem:[%s6611_s1 + $0x38] sm:$0xff]   ;;  %v60_v33 = vld [vmem:[%s6610_s0 + $0x40] sm:$0xff] }
  0x30   :  { %4452 = vmatpush3.bf16.msra.mxu0 %v5314_v10  ;;  %v5331_v27 = vld [vmem:[%s6611_s1 + $0xb0] sm:$0xff]   ;;  %v5335_v31 = vld [vmem:[%s6611_s1 + $0xb8] sm:$0xff]   ;;  %v53_v34 = vld [vmem:[%s6610_s0 + $0x8] sm:$0xff]  ;;  %v4216_v35 = vcombine.low %v52_v32, %v60_v33  ;;  %v4217_v36 = vcombine.high %v52_v32, %v60_v33 }
  0x31   :  { %4492 = vmatpush3.bf16.msra.mxu1 %v5315_v11  ;;  %4453 = vmatprep.subr.bf16.mxu0 %v5316_v12  ;;  %v61_v37 = vld [vmem:[%s6610_s0 + $0x48] sm:$0xff]  ;;  %v5336_v40 = vld [vmem:[%s6611_s1 + $0x140] sm:$0xff]   ;;  %v5344_v56 = vld [vmem:[%s6611_s1 + $0x150] sm:$0xff]  }
  0x32   :  { %4493 = vmatprep.subr.bf16.mxu1 %v5317_v13  ;;  %v4218_v38 = vcombine.low %v53_v34, %v61_v37  ;;  %v4219_v39 = vcombine.high %v53_v34, %v61_v37  ;;  %1499 = vmatprep.mubr.bf16.mxu0 %v4217_v36  ;;  %v5337_v41 = vld [vmem:[%s6611_s1 + $0x1c0] sm:$0xff]   ;;  %v5340_v44 = vld [vmem:[%s6611_s1 + $0x148] sm:$0xff]   ;;  %v5345_v57 = vld [vmem:[%s6611_s1 + $0x1d0] sm:$0xff]  }
  0x33   :  { %v5338_v42 = vld [vmem:[%s6611_s1 + $0x100] sm:$0xff]   ;;  %v5341_v45 = vld [vmem:[%s6611_s1 + $0x1c8] sm:$0xff]   ;;  %v5346_v58 = vld [vmem:[%s6611_s1 + $0x110] sm:$0xff]  }
  0x34   :  { %4454 = vmatpush3.bf16.msra.mxu0 %v5318_v14  ;;  %1564 = vmatprep.mubr.bf16.mxu1 %v4219_v39  ;;  %v5339_v43 = vld [vmem:[%s6611_s1 + $0x180] sm:$0xff]   ;;  %v5342_v46 = vld [vmem:[%s6611_s1 + $0x108] sm:$0xff]   ;;  %v5347_v59 = vld [vmem:[%s6611_s1 + $0x190] sm:$0xff]  }
  0x35   :  { %4494 = vmatpush3.bf16.msra.mxu1 %v5319_v15  ;;  %4455 = vmatprep.subr.bf16.mxu0 %v5320_v16  ;;  %v5343_v47 = vld [vmem:[%s6611_s1 + $0x188] sm:$0xff]   ;;  %v68_v48 = vld [vmem:[%s6610_s0 + $0x80] sm:$0xff]  ;;  %v5348_v60 = vld [vmem:[%s6611_s1 + $0x158] sm:$0xff]  }
  0x36   :  { %4495 = vmatprep.subr.bf16.mxu1 %v5321_v17  ;;  %v76_v49 = vld [vmem:[%s6610_s0 + $0xc0] sm:$0xff]  ;;  %v69_v51 = vld [vmem:[%s6610_s0 + $0x88] sm:$0xff]  ;;  %v5349_v61 = vld [vmem:[%s6611_s1 + $0x1d8] sm:$0xff]  }
  0x37   :  { %v4233_v50 = vcombine.high %v68_v48, %v76_v49  ;;  %v77_v52 = vld [vmem:[%s6610_s0 + $0xc8] sm:$0xff]  ;;  %v4232_v53 = vcombine.low %v68_v48, %v76_v49  ;;  %v5350_v62 = vld [vmem:[%s6611_s1 + $0x118] sm:$0xff]   ;;  %v84_v0 = vld [vmem:[%s6610_s0 + $0x100] sm:$0xff] }
  0x38   :  { %4456 = vmatpush3.bf16.msra.mxu0 %v5322_v18  ;;  %v4235_v54 = vcombine.high %v69_v51, %v77_v52  ;;  %v4234_v55 = vcombine.low %v69_v51, %v77_v52  ;;  %v5351_v63 = vld [vmem:[%s6611_s1 + $0x198] sm:$0xff]   ;;  %v92_v1 = vld [vmem:[%s6610_s0 + $0x140] sm:$0xff]  ;;  %v85_v2 = vld [vmem:[%s6610_s0 + $0x108] sm:$0xff] }
  0x39   :  { %4496 = vmatpush3.bf16.msra.mxu1 %v5323_v19  ;;  %4457 = vmatprep.subr.bf16.mxu0 %v5324_v20  ;;  %v93_v3 = vld [vmem:[%s6610_s0 + $0x148] sm:$0xff]  ;;  %v4249_v4 = vcombine.high %v84_v0, %v92_v1  ;;  %v4248_v6 = vcombine.low %v84_v0, %v92_v1  ;;  %v5352_v8 = vld [vmem:[%s6611_s1 + $0x160] sm:$0xff]   ;;  %v54_v32 = vld [vmem:[%s6610_s0 + $0x10] sm:$0xff] }
  0x3a   :  { %4497 = vmatprep.subr.bf16.mxu1 %v5325_v21  ;;  %v4251_v5 = vcombine.high %v85_v2, %v93_v3  ;;  %v4250_v7 = vcombine.low %v85_v2, %v93_v3  ;;  %v5353_v9 = vld [vmem:[%s6611_s1 + $0x1e0] sm:$0xff]   ;;  %v5356_v12 = vld [vmem:[%s6611_s1 + $0x168] sm:$0xff]   ;;  %v62_v33 = vld [vmem:[%s6610_s0 + $0x50] sm:$0xff] }
  0x3b   :  { %v5354_v10 = vld [vmem:[%s6611_s1 + $0x120] sm:$0xff]   ;;  %v5357_v13 = vld [vmem:[%s6611_s1 + $0x1e8] sm:$0xff]   ;;  %v4220_v34 = vcombine.low %v54_v32, %v62_v33  ;;  %v55_v36 = vld [vmem:[%s6610_s0 + $0x18] sm:$0xff] }
  0x3c   :  { %4458 = vmatpush3.bf16.msra.mxu0 %v5326_v22  ;;  %v5355_v11 = vld [vmem:[%s6611_s1 + $0x1a0] sm:$0xff]   ;;  %v5358_v14 = vld [vmem:[%s6611_s1 + $0x128] sm:$0xff]   ;;  %v63_v37 = vld [vmem:[%s6610_s0 + $0x58] sm:$0xff] }
  0x3d   :  { %4498 = vmatpush3.bf16.msra.mxu1 %v5327_v23  ;;  %4459 = vmatprep.subr.bf16.mxu0 %v5328_v24  ;;  %v5359_v15 = vld [vmem:[%s6611_s1 + $0x1a8] sm:$0xff]   ;;  %v100_v16 = vld [vmem:[%s6610_s0 + $0x180] sm:$0xff]  ;;  %v5360_v24 = vld [vmem:[%s6611_s1 + $0x170] sm:$0xff]   ;;  %v4223_v39 = vcombine.high %v55_v36, %v63_v37 }
  0x3e   :  { %4499 = vmatprep.subr.bf16.mxu1 %v5329_v25  ;;  %v108_v17 = vld [vmem:[%s6610_s0 + $0x1c0] sm:$0xff]  ;;  %v101_v18 = vld [vmem:[%s6610_s0 + $0x188] sm:$0xff]  ;;  %v5361_v25 = vld [vmem:[%s6611_s1 + $0x1f0] sm:$0xff]  }
  0x3f   :  { %v4265_v19 = vcombine.high %v100_v16, %v108_v17  ;;  %v109_v20 = vld [vmem:[%s6610_s0 + $0x1c8] sm:$0xff]  ;;  %v4264_v21 = vcombine.low %v100_v16, %v108_v17  ;;  %v70_v48 = vld [vmem:[%s6610_s0 + $0x90] sm:$0xff]  ;;  %v79_v51 = vld [vmem:[%s6610_s0 + $0xd8] sm:$0xff] }
  0x40   :  { %4460 = vmatpush3.bf16.msra.mxu0 %v5330_v26  ;;  %v4267_v22 = vcombine.high %v101_v18, %v109_v20  ;;  %v4266_v23 = vcombine.low %v101_v18, %v109_v20  ;;  %v5362_v26 = vld [vmem:[%s6611_s1 + $0x130] sm:$0xff]   ;;  %v87_v2 = vld [vmem:[%s6610_s0 + $0x118] sm:$0xff] }
  0x41   :  { %4500 = vmatpush3.bf16.msra.mxu1 %v5331_v27  ;;  %4461 = vmatprep.subr.bf16.mxu0 %v5332_v28  ;;  %v5363_v27 = vld [vmem:[%s6611_s1 + $0x1b0] sm:$0xff]   ;;  %v5364_v28 = vld [vmem:[%s6611_s1 + $0x178] sm:$0xff]  }
  0x42   :  { %4501 = vmatprep.subr.bf16.mxu1 %v5333_v29  ;;  %v5365_v29 = vld [vmem:[%s6611_s1 + $0x1f8] sm:$0xff]   ;;  %v78_v49 = vld [vmem:[%s6610_s0 + $0xd0] sm:$0xff] }
  0x43   :  { %v4237_v52 = vcombine.high %v70_v48, %v78_v49  ;;  %v86_v0 = vld [vmem:[%s6610_s0 + $0x110] sm:$0xff]  ;;  %v111_v20 = vld [vmem:[%s6610_s0 + $0x1d8] sm:$0xff] }
  0x44   :  { %4462 = vmatpush3.bf16.msra.mxu0 %v5334_v30  ;;  %v5366_v30 = vld [vmem:[%s6611_s1 + $0x138] sm:$0xff]   ;;  %v94_v1 = vld [vmem:[%s6610_s0 + $0x150] sm:$0xff] }
  0x45   :  { %4502 = vmatpush3.bf16.msra.mxu1 %v5335_v31  ;;  %4527 = vmatprep.subr.bf16.mxu0 %v5336_v40  ;;  %v5367_v31 = vld [vmem:[%s6611_s1 + $0x1b8] sm:$0xff]   ;;  %v5368_v40 = vld [vmem:[%s6611_s1 + $0x240] sm:$0xff]   ;;  %v4253_v3 = vcombine.high %v86_v0, %v94_v1  ;;  %v102_v16 = vld [vmem:[%s6610_s0 + $0x190] sm:$0xff] }
  0x46   :  { %4567 = vmatprep.subr.bf16.mxu1 %v5337_v41  ;;  %v5369_v41 = vld [vmem:[%s6611_s1 + $0x2c0] sm:$0xff]   ;;  %v110_v17 = vld [vmem:[%s6610_s0 + $0x1d0] sm:$0xff] }
  0x47   :  { %1500 = vmatmul.mubr.bf16.vlgmr.msra.gmra.mrb[0].mxu0 %v4216_v35  ;;  %v4221_v35 = vcombine.high %v54_v32, %v62_v33  ;;  %v4269_v18 = vcombine.high %v102_v16, %v110_v17  ;;  %v56_v32 = vld [vmem:[%s6610_s0 + $0x20] sm:$0xff] }
  0x48   :  { %1565 = vmatmul.mubr.bf16.vlgmr.msra.gmra.mrb[0].mxu1 %v4218_v38  ;;  %4528 = vmatpush3.bf16.msra.mxu0 %v5338_v42  ;;  %v4222_v38 = vcombine.low %v55_v36, %v63_v37  ;;  %v5370_v42 = vld [vmem:[%s6611_s1 + $0x200] sm:$0xff]  }
  0x49   :  { %4568 = vmatpush3.bf16.msra.mxu1 %v5339_v43  ;;  %4529 = vmatprep.subr.bf16.mxu0 %v5340_v44  ;;  %v5371_v43 = vld [vmem:[%s6611_s1 + $0x280] sm:$0xff]   ;;  %v5372_v44 = vld [vmem:[%s6611_s1 + $0x248] sm:$0xff]  }
  0x4a   :  { %4569 = vmatprep.subr.bf16.mxu1 %v5341_v45  ;;  %1507 = vmatprep.mubr.bf16.mxu0 %v4233_v50  ;;  %v5373_v45 = vld [vmem:[%s6611_s1 + $0x2c8] sm:$0xff]   ;;  %v71_v50 = vld [vmem:[%s6610_s0 + $0x98] sm:$0xff]  ;;  %v64_v33 = vld [vmem:[%s6610_s0 + $0x60] sm:$0xff] }
  0x4b   :  { %1572 = vmatprep.mubr.bf16.mxu1 %v4235_v54  ;;  %v4236_v54 = vcombine.low %v70_v48, %v78_v49  ;;  %v4224_v36 = vcombine.low %v56_v32, %v64_v33  ;;  %v4225_v37 = vcombine.high %v56_v32, %v64_v33  ;;  %v72_v48 = vld [vmem:[%s6610_s0 + $0xa0] sm:$0xff]  ;;  %v58_v32 = vld [vmem:[%s6610_s0 + $0x30] sm:$0xff] }
  0x4c   :  { %4530 = vmatpush3.bf16.msra.mxu0 %v5342_v46  ;;  %v5374_v46 = vld [vmem:[%s6611_s1 + $0x208] sm:$0xff]   ;;  %v80_v49 = vld [vmem:[%s6610_s0 + $0xe0] sm:$0xff]  ;;  %v66_v33 = vld [vmem:[%s6610_s0 + $0x70] sm:$0xff] }
  0x4d   :  { %4570 = vmatpush3.bf16.msra.mxu1 %v5343_v47  ;;  %4531 = vmatprep.subr.bf16.mxu0 %v5344_v56  ;;  %v5375_v47 = vld [vmem:[%s6611_s1 + $0x288] sm:$0xff]   ;;  %v5376_v56 = vld [vmem:[%s6611_s1 + $0x250] sm:$0xff]  }
  0x4e   :  { %4571 = vmatprep.subr.bf16.mxu1 %v5345_v57  ;;  %v5377_v57 = vld [vmem:[%s6611_s1 + $0x2d0] sm:$0xff]  }
  0x4f   :  { %1508 = vmatmul.mubr.bf16.gmra.mrb[4].mxu0 %v4232_v53  ;;  %v4239_v53 = vcombine.high %v71_v50, %v79_v51 }
  0x50   :  { %1573 = vmatmul.mubr.bf16.gmra.mrb[4].mxu1 %v4234_v55  ;;  %4532 = vmatpush3.bf16.msra.mxu0 %v5346_v58  ;;  %v4238_v55 = vcombine.low %v71_v50, %v79_v51  ;;  %v5378_v58 = vld [vmem:[%s6611_s1 + $0x210] sm:$0xff]   ;;  %v73_v50 = vld [vmem:[%s6610_s0 + $0xa8] sm:$0xff]  ;;  %v4241_v51 = vcombine.high %v72_v48, %v80_v49 }
  0x51   :  { %4572 = vmatpush3.bf16.msra.mxu1 %v5347_v59  ;;  %4533 = vmatprep.subr.bf16.mxu0 %v5348_v60  ;;  %v5379_v59 = vld [vmem:[%s6611_s1 + $0x290] sm:$0xff]   ;;  %v5380_v60 = vld [vmem:[%s6611_s1 + $0x258] sm:$0xff]  }
  0x52   :  { %4573 = vmatprep.subr.bf16.mxu1 %v5349_v61  ;;  %1515 = vmatprep.mubr.bf16.mxu0 %v4249_v4  ;;  %v5381_v61 = vld [vmem:[%s6611_s1 + $0x2d8] sm:$0xff]  }
  0x53   :  { %1580 = vmatprep.mubr.bf16.mxu1 %v4251_v5  ;;  %v95_v4 = vld [vmem:[%s6610_s0 + $0x158] sm:$0xff]  ;;  %v4252_v5 = vcombine.low %v86_v0, %v94_v1  ;;  %v88_v0 = vld [vmem:[%s6610_s0 + $0x120] sm:$0xff] }
  0x54   :  { %4534 = vmatpush3.bf16.msra.mxu0 %v5350_v62  ;;  %v5382_v62 = vld [vmem:[%s6611_s1 + $0x218] sm:$0xff]   ;;  %v96_v1 = vld [vmem:[%s6610_s0 + $0x160] sm:$0xff] }
  0x55   :  { %4574 = vmatpush3.bf16.msra.mxu1 %v5351_v63  ;;  %4535 = vmatprep.subr.bf16.mxu0 %v5352_v8  ;;  %v5383_v63 = vld [vmem:[%s6611_s1 + $0x298] sm:$0xff]   ;;  %v5384_v8 = vld [vmem:[%s6611_s1 + $0x260] sm:$0xff]  }
  0x56   :  { %4575 = vmatprep.subr.bf16.mxu1 %v5353_v9  ;;  %v5385_v9 = vld [vmem:[%s6611_s1 + $0x2e0] sm:$0xff]  }
  0x57   :  { %1516 = vmatmul.mubr.bf16.gmra.mrb[8].mxu0 %v4248_v6  ;;  %v4255_v6 = vcombine.high %v87_v2, %v95_v4 }
  0x58   :  { %1581 = vmatmul.mubr.bf16.gmra.mrb[8].mxu1 %v4250_v7  ;;  %4536 = vmatpush3.bf16.msra.mxu0 %v5354_v10  ;;  %v4254_v7 = vcombine.low %v87_v2, %v95_v4  ;;  %v5386_v10 = vld [vmem:[%s6611_s1 + $0x220] sm:$0xff]   ;;  %v4257_v2 = vcombine.high %v88_v0, %v96_v1  ;;  %v97_v4 = vld [vmem:[%s6610_s0 + $0x168] sm:$0xff] }
  0x59   :  { %4576 = vmatpush3.bf16.msra.mxu1 %v5355_v11  ;;  %4537 = vmatprep.subr.bf16.mxu0 %v5356_v12  ;;  %v5387_v11 = vld [vmem:[%s6611_s1 + $0x2a0] sm:$0xff]   ;;  %v5388_v12 = vld [vmem:[%s6611_s1 + $0x268] sm:$0xff]  }
  0x5a   :  { %4577 = vmatprep.subr.bf16.mxu1 %v5357_v13  ;;  %1523 = vmatprep.mubr.bf16.mxu0 %v4265_v19  ;;  %v5389_v13 = vld [vmem:[%s6611_s1 + $0x2e8] sm:$0xff]   ;;  %v103_v19 = vld [vmem:[%s6610_s0 + $0x198] sm:$0xff] }
  0x5b   :  { %1588 = vmatprep.mubr.bf16.mxu1 %v4267_v22  ;;  %v4271_v22 = vcombine.high %v103_v19, %v111_v20 }
  0x5c   :  { %4538 = vmatpush3.bf16.msra.mxu0 %v5358_v14  ;;  %v5390_v14 = vld [vmem:[%s6611_s1 + $0x228] sm:$0xff]  }
  0x5d   :  { %4578 = vmatpush3.bf16.msra.mxu1 %v5359_v15  ;;  %4539 = vmatprep.subr.bf16.mxu0 %v5360_v24  ;;  %v5391_v15 = vld [vmem:[%s6611_s1 + $0x2a8] sm:$0xff]   ;;  %v5392_v24 = vld [vmem:[%s6611_s1 + $0x270] sm:$0xff]  }
  0x5e   :  { %4579 = vmatprep.subr.bf16.mxu1 %v5361_v25  ;;  %v5393_v25 = vld [vmem:[%s6611_s1 + $0x2f0] sm:$0xff]  }
  0x5f   :  { %1524 = vmatmul.mubr.bf16.gmra.mrb[12].mxu0 %v4264_v21  ;;  %v4268_v21 = vcombine.low %v102_v16, %v110_v17  ;;  %v104_v16 = vld [vmem:[%s6610_s0 + $0x1a0] sm:$0xff] }
  0x60   :  { %1589 = vmatmul.mubr.bf16.gmra.mrb[12].mxu1 %v4266_v23  ;;  %4540 = vmatpush3.bf16.msra.mxu0 %v5362_v26  ;;  %v4270_v23 = vcombine.low %v103_v19, %v111_v20  ;;  %v5394_v26 = vld [vmem:[%s6611_s1 + $0x230] sm:$0xff]   ;;  %v112_v17 = vld [vmem:[%s6610_s0 + $0x1e0] sm:$0xff]  ;;  %v113_v19 = vld [vmem:[%s6610_s0 + $0x1e8] sm:$0xff] }
  0x61   :  { %4580 = vmatpush3.bf16.msra.mxu1 %v5363_v27  ;;  %4541 = vmatprep.subr.bf16.mxu0 %v5364_v28  ;;  %v5395_v27 = vld [vmem:[%s6611_s1 + $0x2b0] sm:$0xff]   ;;  %v5396_v28 = vld [vmem:[%s6611_s1 + $0x278] sm:$0xff]   ;;  %v4273_v20 = vcombine.high %v104_v16, %v112_v17 }
  0x62   :  { %4581 = vmatprep.subr.bf16.mxu1 %v5365_v29  ;;  %1629 = vmatprep.mubr.bf16.mxu0 %v4221_v35  ;;  %v5397_v29 = vld [vmem:[%s6611_s1 + $0x2f8] sm:$0xff]   ;;  %v65_v35 = vld [vmem:[%s6610_s0 + $0x68] sm:$0xff] }
  0x63   :  { %1694 = vmatprep.mubr.bf16.mxu1 %v4223_v39 }
  0x64   :  { %4542 = vmatpush3.bf16.msra.mxu0 %v5366_v30  ;;  %v5398_v30 = vld [vmem:[%s6611_s1 + $0x238] sm:$0xff]  }
  0x65   :  { %4582 = vmatpush3.bf16.msra.mxu1 %v5367_v31  ;;  %4607 = vmatprep.subr.bf16.mxu0 %v5368_v40  ;;  %v5399_v31 = vld [vmem:[%s6611_s1 + $0x2b8] sm:$0xff]   ;;  %v5400_v40 = vld [vmem:[%s6611_s1 + $0x340] sm:$0xff]  }
  0x66   :  { %4647 = vmatprep.subr.bf16.mxu1 %v5369_v41  ;;  %v5401_v41 = vld [vmem:[%s6611_s1 + $0x3c0] sm:$0xff]  }
  0x67   :  { %1630 = vmatmul.mubr.bf16.vlgmr.msra.gmra.mrb[16].mxu0 %v4220_v34  ;;  %v57_v34 = vld [vmem:[%s6610_s0 + $0x28] sm:$0xff] }
  0x68   :  { %1695 = vmatmul.mubr.bf16.vlgmr.msra.gmra.mrb[16].mxu1 %v4222_v38  ;;  %4608 = vmatpush3.bf16.msra.mxu0 %v5370_v42  ;;  %v4226_v38 = vcombine.low %v57_v34, %v65_v35  ;;  %v4227_v39 = vcombine.high %v57_v34, %v65_v35  ;;  %v5402_v42 = vld [vmem:[%s6611_s1 + $0x300] sm:$0xff]   ;;  %v59_v34 = vld [vmem:[%s6610_s0 + $0x38] sm:$0xff]  ;;  %v4228_v35 = vcombine.low %v58_v32, %v66_v33 }
  0x69   :  { %4648 = vmatpush3.bf16.msra.mxu1 %v5371_v43  ;;  %4609 = vmatprep.subr.bf16.mxu0 %v5372_v44  ;;  %v5403_v43 = vld [vmem:[%s6611_s1 + $0x380] sm:$0xff]   ;;  %v5404_v44 = vld [vmem:[%s6611_s1 + $0x348] sm:$0xff]  }
  0x6a   :  { %4649 = vmatprep.subr.bf16.mxu1 %v5373_v45  ;;  %1637 = vmatprep.mubr.bf16.mxu0 %v4237_v52  ;;  %v5405_v45 = vld [vmem:[%s6611_s1 + $0x3c8] sm:$0xff]  }
  0x6b   :  { %1702 = vmatprep.mubr.bf16.mxu1 %v4239_v53  ;;  %v81_v52 = vld [vmem:[%s6610_s0 + $0xe8] sm:$0xff]  ;;  %v4240_v53 = vcombine.low %v72_v48, %v80_v49 }
  0x6c   :  { %4610 = vmatpush3.bf16.msra.mxu0 %v5374_v46  ;;  %v5406_v46 = vld [vmem:[%s6611_s1 + $0x308] sm:$0xff]  }
  0x6d   :  { %4650 = vmatpush3.bf16.msra.mxu1 %v5375_v47  ;;  %4611 = vmatprep.subr.bf16.mxu0 %v5376_v56  ;;  %v5407_v47 = vld [vmem:[%s6611_s1 + $0x388] sm:$0xff]   ;;  %v5408_v56 = vld [vmem:[%s6611_s1 + $0x350] sm:$0xff]  }
  0x6e   :  { %4651 = vmatprep.subr.bf16.mxu1 %v5377_v57  ;;  %v5409_v57 = vld [vmem:[%s6611_s1 + $0x3d0] sm:$0xff]   ;;  %v1996_v48 = vld [vmem:[#allocation3 + $0x8] sm:$0xff] }
  0x6f   :  { %1638 = vmatmul.mubr.bf16.gmra.mrb[20].mxu0 %v4236_v54  ;;  %v4243_v54 = vcombine.high %v73_v50, %v81_v52 }
  0x70   :  { %1703 = vmatmul.mubr.bf16.gmra.mrb[20].mxu1 %v4238_v55  ;;  %4612 = vmatpush3.bf16.msra.mxu0 %v5378_v58  ;;  %v4242_v55 = vcombine.low %v73_v50, %v81_v52  ;;  %v5410_v58 = vld [vmem:[%s6611_s1 + $0x310] sm:$0xff]  }
  0x71   :  { %4652 = vmatpush3.bf16.msra.mxu1 %v5379_v59  ;;  %4613 = vmatprep.subr.bf16.mxu0 %v5380_v60  ;;  %v5411_v59 = vld [vmem:[%s6611_s1 + $0x390] sm:$0xff]   ;;  %v5412_v60 = vld [vmem:[%s6611_s1 + $0x358] sm:$0xff]  }
  0x72   :  { %4653 = vmatprep.subr.bf16.mxu1 %v5381_v61  ;;  %1645 = vmatprep.mubr.bf16.mxu0 %v4253_v3  ;;  %v5413_v61 = vld [vmem:[%s6611_s1 + $0x3d8] sm:$0xff]   ;;  %v89_v3 = vld [vmem:[%s6610_s0 + $0x128] sm:$0xff]  ;;  %v90_v50 = vld [vmem:[%s6610_s0 + $0x130] sm:$0xff] }
  0x73   :  { %1710 = vmatprep.mubr.bf16.mxu1 %v4255_v6  ;;  %v4259_v6 = vcombine.high %v89_v3, %v97_v4  ;;  %v1997_v52 = vld [vmem:[#allocation3 + $0x10] sm:$0xff] }
  0x74   :  { %4614 = vmatpush3.bf16.msra.mxu0 %v5382_v62  ;;  %v5414_v62 = vld [vmem:[%s6611_s1 + $0x318] sm:$0xff]  }
  0x75   :  { %4654 = vmatpush3.bf16.msra.mxu1 %v5383_v63  ;;  %4615 = vmatprep.subr.bf16.mxu0 %v5384_v8  ;;  %v5415_v63 = vld [vmem:[%s6611_s1 + $0x398] sm:$0xff]   ;;  %v5416_v8 = vld [vmem:[%s6611_s1 + $0x360] sm:$0xff]  }
  0x76   :  { %4655 = vmatprep.subr.bf16.mxu1 %v5385_v9  ;;  %v5417_v9 = vld [vmem:[%s6611_s1 + $0x3e0] sm:$0xff]  }
  0x77   :  { %1646 = vmatmul.mubr.bf16.gmra.mrb[24].mxu0 %v4252_v5  ;;  %v4256_v5 = vcombine.low %v88_v0, %v96_v1  ;;  %v115_v0 = vld [vmem:[%s6610_s0 + $0x1f8] sm:$0xff] }
  0x78   :  { %1711 = vmatmul.mubr.bf16.gmra.mrb[24].mxu1 %v4254_v7  ;;  %4616 = vmatpush3.bf16.msra.mxu0 %v5386_v10  ;;  %v4258_v7 = vcombine.low %v89_v3, %v97_v4  ;;  %v5418_v10 = vld [vmem:[%s6611_s1 + $0x320] sm:$0xff]  }
  0x79   :  { %4656 = vmatpush3.bf16.msra.mxu1 %v5387_v11  ;;  %4617 = vmatprep.subr.bf16.mxu0 %v5388_v12  ;;  %v5419_v11 = vld [vmem:[%s6611_s1 + $0x3a0] sm:$0xff]   ;;  %v5420_v12 = vld [vmem:[%s6611_s1 + $0x368] sm:$0xff]  }
  0x7a   :  { %4657 = vmatprep.subr.bf16.mxu1 %v5389_v13  ;;  %1653 = vmatprep.mubr.bf16.mxu0 %v4269_v18  ;;  %v5421_v13 = vld [vmem:[%s6611_s1 + $0x3e8] sm:$0xff]  }
  0x7b   :  { %1718 = vmatprep.mubr.bf16.mxu1 %v4271_v22  ;;  %v105_v18 = vld [vmem:[%s6610_s0 + $0x1a8] sm:$0xff]  ;;  %v4272_v22 = vcombine.low %v104_v16, %v112_v17 }
  0x7c   :  { %4618 = vmatpush3.bf16.msra.mxu0 %v5390_v14  ;;  %v5422_v14 = vld [vmem:[%s6611_s1 + $0x328] sm:$0xff]  }
  0x7d   :  { %4658 = vmatpush3.bf16.msra.mxu1 %v5391_v15  ;;  %4619 = vmatprep.subr.bf16.mxu0 %v5392_v24  ;;  %v5423_v15 = vld [vmem:[%s6611_s1 + $0x3a8] sm:$0xff]   ;;  %v5424_v24 = vld [vmem:[%s6611_s1 + $0x370] sm:$0xff]  }
  0x7e   :  { %4659 = vmatprep.subr.bf16.mxu1 %v5393_v25  ;;  %v5425_v25 = vld [vmem:[%s6611_s1 + $0x3f0] sm:$0xff]  }
  0x7f   :  { %1654 = vmatmul.mubr.bf16.gmra.mrb[28].mxu0 %v4268_v21  ;;  %v4275_v21 = vcombine.high %v105_v18, %v113_v19 }
  0x80   :  { %1719 = vmatmul.mubr.bf16.gmra.mrb[28].mxu1 %v4270_v23  ;;  %4620 = vmatpush3.bf16.msra.mxu0 %v5394_v26  ;;  %v4274_v23 = vcombine.low %v105_v18, %v113_v19  ;;  %v5426_v26 = vld [vmem:[%s6611_s1 + $0x330] sm:$0xff]  }
  0x81   :  { %4660 = vmatpush3.bf16.msra.mxu1 %v5395_v27  ;;  %4621 = vmatprep.subr.bf16.mxu0 %v5396_v28  ;;  %v5427_v27 = vld [vmem:[%s6611_s1 + $0x3b0] sm:$0xff]   ;;  %v5428_v28 = vld [vmem:[%s6611_s1 + $0x378] sm:$0xff]  }
  0x82   :  { %4661 = vmatprep.subr.bf16.mxu1 %v5397_v29  ;;  %1759 = vmatprep.mubr.bf16.mxu0 %v4225_v37  ;;  %v5429_v29 = vld [vmem:[%s6611_s1 + $0x3f8] sm:$0xff]  }
  0x83   :  { %1824 = vmatprep.mubr.bf16.mxu1 %v4227_v39  ;;  %v67_v37 = vld [vmem:[%s6610_s0 + $0x78] sm:$0xff]  ;;  %v82_v39 = vld [vmem:[%s6610_s0 + $0xf0] sm:$0xff] }
  0x84   :  { %4622 = vmatpush3.bf16.msra.mxu0 %v5398_v30  ;;  %v5430_v30 = vld [vmem:[%s6611_s1 + $0x338] sm:$0xff]  }
  0x85   :  { %4662 = vmatpush3.bf16.msra.mxu1 %v5399_v31  ;;  %4687 = vmatprep.subr.bf16.mxu0 %v5400_v40  ;;  %v5431_v31 = vld [vmem:[%s6611_s1 + $0x3b8] sm:$0xff]   ;;  %v4230_v40 = vcombine.low %v59_v34, %v67_v37 }
  0x86   :  { %4727 = vmatprep.subr.bf16.mxu1 %v5401_v41  ;;  %v4231_v41 = vcombine.high %v59_v34, %v67_v37 }
  0x87   :  { %1760 = vmatmul.mubr.bf16.vlgmr.msra.gmra.mrb[32].mxu0 %v4224_v36  ;;  %v4229_v36 = vcombine.high %v58_v32, %v66_v33 }
  0x88   :  { %1825 = vmatmul.mubr.bf16.vlgmr.msra.gmra.mrb[32].mxu1 %v4226_v38  ;;  %4688 = vmatpush3.bf16.msra.mxu0 %v5402_v42  ;;  %v74_v38 = vld [vmem:[%s6610_s0 + $0xb0] sm:$0xff] }
  0x89   :  { %4728 = vmatpush3.bf16.msra.mxu1 %v5403_v43  ;;  %4689 = vmatprep.subr.bf16.mxu0 %v5404_v44  ;;  %v4245_v42 = vcombine.high %v74_v38, %v82_v39  ;;  %v75_v43 = vld [vmem:[%s6610_s0 + $0xb8] sm:$0xff] }
  0x8a   :  { %4729 = vmatprep.subr.bf16.mxu1 %v5405_v45  ;;  %1767 = vmatprep.mubr.bf16.mxu0 %v4241_v51  ;;  %v83_v44 = vld [vmem:[%s6610_s0 + $0xf8] sm:$0xff]  ;;  %v5612_v45 = vmov 0.0|0.0   ;;  %v98_v51 = vld [vmem:[%s6610_s0 + $0x170] sm:$0xff] }
  0x8b   :  { %1832 = vmatprep.mubr.bf16.mxu1 %v4243_v54  ;;  %v91_v54 = vld [vmem:[%s6610_s0 + $0x138] sm:$0xff]  ;;  %v4260_v1 = vcombine.low %v90_v50, %v98_v51 }
  0x8c   :  { %4690 = vmatpush3.bf16.msra.mxu0 %v5406_v46  ;;  %v1995_v46 = vld [vmem:[#allocation3] sm:$0xff] }
  0x8d   :  { %4730 = vmatpush3.bf16.msra.mxu1 %v5407_v47  ;;  %4691 = vmatprep.subr.bf16.mxu0 %v5408_v56  ;;  %v4247_v47 = vcombine.high %v75_v43, %v83_v44  ;;  %v6230_v49 = vpack.c.bf16 %v1996_v48, %v1995_v46 }
  0x8e   :  { %4731 = vmatprep.subr.bf16.mxu1 %v5409_v57  ;;  %v4244_v57 = vcombine.low %v74_v38, %v82_v39 }
  0x8f   :  { %1768 = vmatmul.mubr.bf16.gmra.mrb[36].mxu0 %v4240_v53  ;;  %v1998_v53 = vld [vmem:[#allocation3 + $0x18] sm:$0xff] }
  0x90   :  { %1833 = vmatmul.mubr.bf16.gmra.mrb[36].mxu1 %v4242_v55  ;;  %4692 = vmatpush3.bf16.msra.mxu0 %v5410_v58  ;;  %v99_v55 = vld [vmem:[%s6610_s0 + $0x178] sm:$0xff]  ;;  %v6246_v56 = vpack.c.bf16 %v1998_v53, %v1997_v52  ;;  %v4246_v58 = vcombine.low %v75_v43, %v83_v44 }
  0x91   :  { %4732 = vmatpush3.bf16.msra.mxu1 %v5411_v59  ;;  %4693 = vmatprep.subr.bf16.mxu0 %v5412_v60  ;;  %v4261_v59 = vcombine.high %v90_v50, %v98_v51  ;;  %v4263_v60 = vcombine.high %v91_v54, %v99_v55 }
  0x92   :  { %4733 = vmatprep.subr.bf16.mxu1 %v5413_v61  ;;  %1775 = vmatprep.mubr.bf16.mxu0 %v4257_v2  ;;  %v106_v61 = vld [vmem:[%s6610_s0 + $0x1b0] sm:$0xff]  ;;  %v4262_v2 = vcombine.low %v91_v54, %v99_v55 }
  0x93   :  { %1840 = vmatprep.mubr.bf16.mxu1 %v4259_v6 }
  0x94   :  { %4694 = vmatpush3.bf16.msra.mxu0 %v5414_v62  ;;  %v114_v62 = vld [vmem:[%s6610_s0 + $0x1f0] sm:$0xff] }
  0x95   :  { %4734 = vmatpush3.bf16.msra.mxu1 %v5415_v63  ;;  %4695 = vmatprep.subr.bf16.mxu0 %v5416_v8  ;;  %v107_v63 = vld [vmem:[%s6610_s0 + $0x1b8] sm:$0xff]  ;;  %v4277_v3 = vcombine.high %v106_v61, %v114_v62 }
  0x96   :  { %4735 = vmatprep.subr.bf16.mxu1 %v5417_v9  ;;  %v4279_v4 = vcombine.high %v107_v63, %v115_v0  ;;  %v4278_v6 = vcombine.low %v107_v63, %v115_v0 }
  0x97   :  { %1776 = vmatmul.mubr.bf16.gmra.mrb[40].mxu0 %v4256_v5  ;;  %v4276_v5 = vcombine.low %v106_v61, %v114_v62 }
  0x98   :  { %1841 = vmatmul.mubr.bf16.gmra.mrb[40].mxu1 %v4258_v7  ;;  %4696 = vmatpush3.bf16.msra.mxu0 %v5418_v10  ;;  %v5614_v7 = vmov 0.0   ;;  %v4215_v10 = vld [vmem:[%s6613_s3] ss:$0 sm:$0xff]  ;;  %s5615_s3 = smov 32  }
  0x99   :  { %4736 = vmatpush3.bf16.msra.mxu1 %v5419_v11  ;;  %4697 = vmatprep.subr.bf16.mxu0 %v5420_v12 }
  0x9a   :  { %4737 = vmatprep.subr.bf16.mxu1 %v5421_v13  ;;  %1783 = vmatprep.mubr.bf16.mxu0 %v4273_v20 }
  0x9b   :  { %1848 = vmatprep.mubr.bf16.mxu1 %v4275_v21 }
  0x9c   :  { %4698 = vmatpush3.bf16.msra.mxu0 %v5422_v14 }
  0x9d   :  { %4738 = vmatpush3.bf16.msra.mxu1 %v5423_v15  ;;  %4699 = vmatprep.subr.bf16.mxu0 %v5424_v24 }
  0x9e   :  { %4739 = vmatprep.subr.bf16.mxu1 %v5425_v25 }
  0x9f   :  { %1784 = vmatmul.mubr.bf16.gmra.mrb[44].mxu0 %v4272_v22 }
  0xa0   :  { %1849 = vmatmul.mubr.bf16.gmra.mrb[44].mxu1 %v4274_v23  ;;  %4700 = vmatpush3.bf16.msra.mxu0 %v5426_v26 }
  0xa1   :  { %4740 = vmatpush3.bf16.msra.mxu1 %v5427_v27  ;;  %4701 = vmatprep.subr.bf16.mxu0 %v5428_v28 }
  0xa2   :  { %4741 = vmatprep.subr.bf16.mxu1 %v5429_v29  ;;  %1889 = vmatprep.mubr.bf16.mxu0 %v4229_v36 }
  0xa3   :  { %1954 = vmatprep.mubr.bf16.mxu1 %v4231_v41 }
  0xa4   :  { %4702 = vmatpush3.bf16.msra.mxu0 %v5430_v30 }
  0xa5   :  { %4742 = vmatpush3.bf16.msra.mxu1 %v5431_v31  ;;  %5151 = vmatprep.subr.bf16.mxu0 %v5612_v45 }
  0xa6   :  { %5157 = vmatprep.subr.bf16.mxu1 %v5612_v45 }
  0xa7   :  { %1890 = vmatmul.mubr.bf16.vlgmr.msra.gmra.mrb[48].mxu0 %v4228_v35 }
  0xa8   :  { %1955 = vmatmul.mubr.bf16.vlgmr.msra.gmra.mrb[48].mxu1 %v4230_v40  ;;  %1897 = vmatprep.mubr.bf16.mxu0 %v4245_v42 }
  0xa9   :  { %1962 = vmatprep.mubr.bf16.mxu1 %v4247_v47  ;;  %5153 = vmatpush3.bf16.msra.mxu0 %v6230_v49 }
  0xaa   :  { %5154 = vmatprep.subr.bf16.mxu0 %v5612_v45 }
  0xad   :  { %5156 = vmatpush3.bf16.msra.mxu0 %v6246_v56 }
  0xae   :  { %5163 = vmatprep.subr.bf16.mxu0 %v5612_v45 }
  0xaf   :  { %1898 = vmatmul.mubr.bf16.gmra.mrb[52].mxu0 %v4244_v57 }
  0xb0   :  { %1963 = vmatmul.mubr.bf16.gmra.mrb[52].mxu1 %v4246_v58  ;;  %1905 = vmatprep.mubr.bf16.mxu0 %v4261_v59 }
  0xb1   :  { %1970 = vmatprep.mubr.bf16.mxu1 %v4263_v60 }
  0xb7   :  { %1906 = vmatmul.mubr.bf16.gmra.mrb[56].mxu0 %v4260_v1 }
  0xb8   :  { %1971 = vmatmul.mubr.bf16.gmra.mrb[56].mxu1 %v4262_v2  ;;  %1913 = vmatprep.mubr.bf16.mxu0 %v4277_v3 }
  0xb9   :  { %1978 = vmatprep.mubr.bf16.mxu1 %v4279_v4 }
  0xbf   :  { %1914 = vmatmul.mubr.bf16.gmra.mrb[60].mxu0 %v4276_v5 }
  0xc0   :  { %1979 = vmatmul.mubr.bf16.gmra.mrb[60].mxu1 %v4278_v6  ;;  %4895 = vmatprep.mubr.msk.f32.mxu0 %vm5613_vm0, %v5614_v7 }
  0xc1   :  { %4906 = vmatprep.mubr.msk.f32.mxu1 %vm5613_vm0, %v5614_v7 }
  0xc7   :  { %4896 = vmatmul.mubr.f32.vlgmr.msra.gmra.mrb[64].mxu0 %v5614_v7 }
  0xc8   :  { %4917 = vmatprep.mubr.msk.f32.mxu0 %vm5613_vm0, %v5614_v7 }
 0x11a   :  { %v4463_v8 = vpop.f32.mrb[0].mxu0 }
 0x11b   :  { %v4503_v9 = vpop.f32.mrb[0].mxu1  ;;  %v4464_v11 = vpop.f32.mrb[1].mxu0 }
 0x11c   :  { %v4465_v12 = vadd.f32 %v4464_v11, %v4463_v8  ;;  %v4504_v13 = vpop.f32.mrb[1].mxu1  ;;  %v4466_v14 = vpop.f32.mrb[2].mxu0 }
 0x11d   :  { %v4505_v15 = vadd.f32 %v4504_v13, %v4503_v9  ;;  %v4506_v16 = vpop.f32.mrb[2].mxu1  ;;  %v4467_v17 = vpop.f32.mrb[3].mxu0 }
 0x11e   :  { %v1502_v18 = vadd.f32 %v4465_v12, %v4215_v10  ;;  %v4468_v19 = vadd.f32 %v4467_v17, %v4466_v14  ;;  %v4507_v20 = vpop.f32.mrb[3].mxu1 }
 0x11f   :  { %v4508_v21 = vadd.f32 %v4507_v20, %v4506_v16 }
 0x120   :  { %v1567_v22 = vadd.f32 %v4505_v15, %v1502_v18  ;;  %v1505_v23 = vadd.f32 %v4468_v19, %v4215_v10 }
 0x122   :  { %v6272_v24 = vadd.f32 %v4508_v21, %v1505_v23  ;;  %v4469_v25 = vpop.f32.mrb[4].mxu0 }
 0x123   :  { %v4509_v26 = vpop.f32.mrb[4].mxu1  ;;  %v4470_v27 = vpop.f32.mrb[5].mxu0 }
 0x124   :  { %v4471_v28 = vadd.f32 %v4470_v27, %v4469_v25  ;;  %v4510_v29 = vpop.f32.mrb[5].mxu1  ;;  %v4472_v30 = vpop.f32.mrb[6].mxu0 }
 0x125   :  { %v4511_v31 = vadd.f32 %v4510_v29, %v4509_v26  ;;  %v4512_v32 = vpop.f32.mrb[6].mxu1  ;;  %v4473_v33 = vpop.f32.mrb[7].mxu0 }
 0x126   :  { %v1510_v34 = vadd.f32 %v4471_v28, %v4215_v10  ;;  %v4474_v35 = vadd.f32 %v4473_v33, %v4472_v30  ;;  %v4513_v36 = vpop.f32.mrb[7].mxu1 }
 0x127   :  { %v4514_v37 = vadd.f32 %v4513_v36, %v4512_v32 }
 0x128   :  { %v1575_v38 = vadd.f32 %v4511_v31, %v1510_v34  ;;  %v1513_v39 = vadd.f32 %v4474_v35, %v4215_v10 }
 0x12a   :  { %v6274_v40 = vadd.f32 %v4514_v37, %v1513_v39  ;;  %v4475_v41 = vpop.f32.mrb[8].mxu0 }
 0x12b   :  { %v4515_v42 = vpop.f32.mrb[8].mxu1  ;;  %v4476_v43 = vpop.f32.mrb[9].mxu0 }
 0x12c   :  { %v4516_v44 = vpop.f32.mrb[9].mxu1  ;;  %v4477_v46 = vadd.f32 %v4476_v43, %v4475_v41  ;;  %v4478_v48 = vpop.f32.mrb[10].mxu0 }
 0x12d   :  { %v4517_v47 = vadd.f32 %v4516_v44, %v4515_v42  ;;  %v4518_v50 = vpop.f32.mrb[10].mxu1  ;;  %v4479_v51 = vpop.f32.mrb[11].mxu0 }
 0x12e   :  { %v4519_v52 = vpop.f32.mrb[11].mxu1  ;;  %v1518_v53 = vadd.f32 %v4477_v46, %v4215_v10  ;;  %v4480_v54 = vadd.f32 %v4479_v51, %v4478_v48 }
 0x12f   :  { %v4520_v55 = vadd.f32 %v4519_v52, %v4518_v50 }
 0x130   :  { %v1583_v57 = vadd.f32 %v4517_v47, %v1518_v53  ;;  %v1521_v58 = vadd.f32 %v4480_v54, %v4215_v10 }
 0x132   :  { %v6276_v59 = vadd.f32 %v4520_v55, %v1521_v58  ;;  %v4481_v60 = vpop.f32.mrb[12].mxu0 }
 0x133   :  { %v4521_v61 = vpop.f32.mrb[12].mxu1  ;;  %v4482_v62 = vpop.f32.mrb[13].mxu0 }
 0x134   :  { %v4483_v63 = vadd.f32 %v4482_v62, %v4481_v60  ;;  %v4522_v0 = vpop.f32.mrb[13].mxu1  ;;  %v4484_v1 = vpop.f32.mrb[14].mxu0 }
 0x135   :  { %v4523_v2 = vadd.f32 %v4522_v0, %v4521_v61  ;;  %v4524_v3 = vpop.f32.mrb[14].mxu1  ;;  %v4485_v4 = vpop.f32.mrb[15].mxu0 }
 0x136   :  { %v1526_v5 = vadd.f32 %v4483_v63, %v4215_v10  ;;  %v4486_v6 = vadd.f32 %v4485_v4, %v4484_v1  ;;  %v4525_v8 = vpop.f32.mrb[15].mxu1 }
 0x137   :  { %v4526_v9 = vadd.f32 %v4525_v8, %v4524_v3 }
 0x138   :  { %v1591_v11 = vadd.f32 %v4523_v2, %v1526_v5  ;;  %v1529_v12 = vadd.f32 %v4486_v6, %v4215_v10 }
 0x13a   :  { %v6278_v13 = vadd.f32 %v4526_v9, %v1529_v12  ;;  %v4543_v14 = vpop.f32.mrb[16].mxu0 }
 0x13b   :  { %v4583_v15 = vpop.f32.mrb[16].mxu1  ;;  %v4544_v16 = vpop.f32.mrb[17].mxu0 }
 0x13c   :  { %v4545_v17 = vadd.f32 %v4544_v16, %v4543_v14  ;;  %v4584_v18 = vpop.f32.mrb[17].mxu1  ;;  %v4546_v19 = vpop.f32.mrb[18].mxu0 }
 0x13d   :  { %v4585_v20 = vadd.f32 %v4584_v18, %v4583_v15  ;;  %v4586_v21 = vpop.f32.mrb[18].mxu1  ;;  %v4547_v23 = vpop.f32.mrb[19].mxu0 }
 0x13e   :  { %v1632_v25 = vadd.f32 %v4545_v17, %v1567_v22  ;;  %v4548_v26 = vadd.f32 %v4547_v23, %v4546_v19  ;;  %v4587_v27 = vpop.f32.mrb[19].mxu1 }
 0x13f   :  { %v4588_v28 = vadd.f32 %v4587_v27, %v4586_v21 }
 0x140   :  { %v1697_v29 = vadd.f32 %v4585_v20, %v1632_v25  ;;  %v1635_v30 = vadd.f32 %v4548_v26, %v6272_v24 }
 0x142   :  { %v6281_v31 = vadd.f32 %v4588_v28, %v1635_v30  ;;  %v4549_v10 = vpop.f32.mrb[20].mxu0 }
 0x143   :  { %v4589_v32 = vpop.f32.mrb[20].mxu1  ;;  %v4550_v33 = vpop.f32.mrb[21].mxu0 }
 0x144   :  { %v4590_v34 = vpop.f32.mrb[21].mxu1  ;;  %v4551_v35 = vadd.f32 %v4550_v33, %v4549_v10  ;;  %v4552_v37 = vpop.f32.mrb[22].mxu0 }
 0x145   :  { %v4591_v36 = vadd.f32 %v4590_v34, %v4589_v32  ;;  %v4592_v39 = vpop.f32.mrb[22].mxu1  ;;  %v4553_v41 = vpop.f32.mrb[23].mxu0 }
 0x146   :  { %v4593_v42 = vpop.f32.mrb[23].mxu1  ;;  %v1640_v43 = vadd.f32 %v4551_v35, %v1575_v38  ;;  %v4554_v22 = vadd.f32 %v4553_v41, %v4552_v37 }
 0x147   :  { %v4594_v44 = vadd.f32 %v4593_v42, %v4592_v39 }
 0x148   :  { %v1705_v46 = vadd.f32 %v4591_v36, %v1640_v43  ;;  %v1643_v47 = vadd.f32 %v4554_v22, %v6274_v40 }
 0x14a   :  { %v6284_v48 = vadd.f32 %v4594_v44, %v1643_v47  ;;  %v4555_v24 = vpop.f32.mrb[24].mxu0 }
 0x14b   :  { %v4595_v50 = vpop.f32.mrb[24].mxu1  ;;  %v4556_v51 = vpop.f32.mrb[25].mxu0 }
 0x14c   :  { %v4557_v52 = vadd.f32 %v4556_v51, %v4555_v24  ;;  %v4596_v53 = vpop.f32.mrb[25].mxu1  ;;  %v4558_v54 = vpop.f32.mrb[26].mxu0 }
 0x14d   :  { %v4597_v55 = vadd.f32 %v4596_v53, %v4595_v50  ;;  %v4598_v58 = vpop.f32.mrb[26].mxu1  ;;  %v4559_v60 = vpop.f32.mrb[27].mxu0 }
 0x14e   :  { %v1648_v61 = vadd.f32 %v4557_v52, %v1583_v57  ;;  %v4560_v62 = vadd.f32 %v4559_v60, %v4558_v54  ;;  %v4599_v63 = vpop.f32.mrb[27].mxu1 }
 0x14f   :  { %v4600_v38 = vadd.f32 %v4599_v63, %v4598_v58 }
 0x150   :  { %v1713_v0 = vadd.f32 %v4597_v55, %v1648_v61  ;;  %v1651_v1 = vadd.f32 %v4560_v62, %v6276_v59 }
 0x152   :  { %v6287_v2 = vadd.f32 %v4600_v38, %v1651_v1  ;;  %v4561_v40 = vpop.f32.mrb[28].mxu0 }
 0x153   :  { %v4601_v3 = vpop.f32.mrb[28].mxu1  ;;  %v4562_v4 = vpop.f32.mrb[29].mxu0 }
 0x154   :  { %v4563_v5 = vadd.f32 %v4562_v4, %v4561_v40  ;;  %v4602_v6 = vpop.f32.mrb[29].mxu1  ;;  %v4564_v8 = vpop.f32.mrb[30].mxu0 }
 0x155   :  { %v4603_v9 = vadd.f32 %v4602_v6, %v4601_v3  ;;  %v4604_v12 = vpop.f32.mrb[30].mxu1  ;;  %v4565_v14 = vpop.f32.mrb[31].mxu0 }
 0x156   :  { %v1656_v15 = vadd.f32 %v4563_v5, %v1591_v11  ;;  %v4566_v16 = vadd.f32 %v4565_v14, %v4564_v8  ;;  %v4605_v57 = vpop.f32.mrb[31].mxu1 }
 0x157   :  { %v4606_v17 = vadd.f32 %v4605_v57, %v4604_v12 }
 0x158   :  { %v1721_v18 = vadd.f32 %v4603_v9, %v1656_v15  ;;  %v1659_v19 = vadd.f32 %v4566_v16, %v6278_v13 }
 0x15a   :  { %v6290_v20 = vadd.f32 %v4606_v17, %v1659_v19  ;;  %v4623_v59 = vpop.f32.mrb[32].mxu0 }
 0x15b   :  { %v4663_v21 = vpop.f32.mrb[32].mxu1  ;;  %v4624_v23 = vpop.f32.mrb[33].mxu0 }
 0x15c   :  { %v4664_v25 = vpop.f32.mrb[33].mxu1  ;;  %v4625_v26 = vadd.f32 %v4624_v23, %v4623_v59  ;;  %v4626_v28 = vpop.f32.mrb[34].mxu0 }
 0x15d   :  { %v4665_v27 = vadd.f32 %v4664_v25, %v4663_v21  ;;  %v4666_v30 = vpop.f32.mrb[34].mxu1  ;;  %v4627_v10 = vpop.f32.mrb[35].mxu0 }
 0x15e   :  { %v4667_v32 = vpop.f32.mrb[35].mxu1  ;;  %v1762_v33 = vadd.f32 %v4625_v26, %v1697_v29  ;;  %v4628_v11 = vadd.f32 %v4627_v10, %v4626_v28 }
 0x15f   :  { %v4668_v34 = vadd.f32 %v4667_v32, %v4666_v30 }
 0x160   :  { %v1827_v35 = vadd.f32 %v4665_v27, %v1762_v33  ;;  %v1765_v36 = vadd.f32 %v4628_v11, %v6281_v31 }
 0x162   :  { %v6293_v37 = vadd.f32 %v4668_v34, %v1765_v36  ;;  %v4629_v13 = vpop.f32.mrb[36].mxu0 }
 0x163   :  { %v4669_v39 = vpop.f32.mrb[36].mxu1  ;;  %v4630_v41 = vpop.f32.mrb[37].mxu0 }
 0x164   :  { %v4631_v42 = vadd.f32 %v4630_v41, %v4629_v13  ;;  %v4670_v43 = vpop.f32.mrb[37].mxu1  ;;  %v4632_v22 = vpop.f32.mrb[38].mxu0 }
 0x165   :  { %v4671_v44 = vadd.f32 %v4670_v43, %v4669_v39  ;;  %v4672_v47 = vpop.f32.mrb[38].mxu1  ;;  %v4633_v24 = vpop.f32.mrb[39].mxu0 }
 0x166   :  { %v1770_v50 = vadd.f32 %v4631_v42, %v1705_v46  ;;  %v4634_v51 = vadd.f32 %v4633_v24, %v4632_v22  ;;  %v4673_v52 = vpop.f32.mrb[39].mxu1 }
 0x167   :  { %v4674_v29 = vadd.f32 %v4673_v52, %v4672_v47 }
 0x168   :  { %v1835_v53 = vadd.f32 %v4671_v44, %v1770_v50  ;;  %v1773_v54 = vadd.f32 %v4634_v51, %v6284_v48 }
 0x16a   :  { %v6296_v55 = vadd.f32 %v4674_v29, %v1773_v54  ;;  %v4635_v31 = vpop.f32.mrb[40].mxu0 }
 0x16b   :  { %v4675_v58 = vpop.f32.mrb[40].mxu1  ;;  %v4636_v60 = vpop.f32.mrb[41].mxu0 }
 0x16c   :  { %v4637_v61 = vadd.f32 %v4636_v60, %v4635_v31  ;;  %v4676_v62 = vpop.f32.mrb[41].mxu1  ;;  %v4638_v63 = vpop.f32.mrb[42].mxu0 }
 0x16d   :  { %v4677_v38 = vadd.f32 %v4676_v62, %v4675_v58  ;;  %v4678_v1 = vpop.f32.mrb[42].mxu1  ;;  %v4639_v40 = vpop.f32.mrb[43].mxu0 }
 0x16e   :  { %v1778_v3 = vadd.f32 %v4637_v61, %v1713_v0  ;;  %v4640_v4 = vadd.f32 %v4639_v40, %v4638_v63  ;;  %v4679_v46 = vpop.f32.mrb[43].mxu1 }
 0x16f   :  { %v4680_v5 = vadd.f32 %v4679_v46, %v4678_v1 }
 0x170   :  { %v6298_v6 = vadd.f32 %v4677_v38, %v1778_v3  ;;  %v1781_v8 = vadd.f32 %v4640_v4, %v6287_v2 }
 0x172   :  { %v6301_v48 = vadd.f32 %v4680_v5, %v1781_v8  ;;  %v4641_v9 = vpop.f32.mrb[44].mxu0 }
 0x173   :  { %v4681_v12 = vpop.f32.mrb[44].mxu1  ;;  %v4642_v14 = vpop.f32.mrb[45].mxu0 }
 0x174   :  { %v4682_v15 = vpop.f32.mrb[45].mxu1  ;;  %v4643_v16 = vadd.f32 %v4642_v14, %v4641_v9  ;;  %v4644_v17 = vpop.f32.mrb[46].mxu0 }
 0x175   :  { %v4683_v57 = vadd.f32 %v4682_v15, %v4681_v12  ;;  %v4684_v19 = vpop.f32.mrb[46].mxu1  ;;  %v4645_v59 = vpop.f32.mrb[47].mxu0 }
 0x176   :  { %v4685_v21 = vpop.f32.mrb[47].mxu1  ;;  %v1786_v0 = vadd.f32 %v4643_v16, %v1721_v18  ;;  %v4646_v23 = vadd.f32 %v4645_v59, %v4644_v17 }
 0x177   :  { %v4686_v25 = vadd.f32 %v4685_v21, %v4684_v19 }
 0x178   :  { %v6303_v26 = vadd.f32 %v4683_v57, %v1786_v0  ;;  %v1789_v27 = vadd.f32 %v4646_v23, %v6290_v20 }
 0x17a   :  { %v6306_v2 = vadd.f32 %v4686_v25, %v1789_v27  ;;  %v4703_v28 = vpop.f32.mrb[48].mxu0 }
 0x17b   :  { %v4743_v30 = vpop.f32.mrb[48].mxu1  ;;  %v4704_v10 = vpop.f32.mrb[49].mxu0 }
 0x17c   :  { %v4705_v32 = vadd.f32 %v4704_v10, %v4703_v28  ;;  %v4744_v33 = vpop.f32.mrb[49].mxu1  ;;  %v4706_v11 = vpop.f32.mrb[50].mxu0 }
 0x17d   :  { %v4745_v34 = vadd.f32 %v4744_v33, %v4743_v30  ;;  %v4746_v36 = vpop.f32.mrb[50].mxu1  ;;  %v4707_v13 = vpop.f32.mrb[51].mxu0 }
 0x17e   :  { %v1892_v39 = vadd.f32 %v4705_v32, %v1827_v35  ;;  %v4708_v41 = vadd.f32 %v4707_v13, %v4706_v11  ;;  %v4747_v18 = vpop.f32.mrb[51].mxu1 }
 0x17f   :  { %v4748_v42 = vadd.f32 %v4747_v18, %v4746_v36 }
 0x180   :  { %v1957_v43 = vadd.f32 %v4745_v34, %v1892_v39  ;;  %v1895_v22 = vadd.f32 %v4708_v41, %v6293_v37 }
 0x182   :  { %1987 = vst [vmem:[#allocation2] sm:$0xff] %v1957_v43  ;;  %v1960_v20 = vadd.f32 %v4748_v42, %v1895_v22  ;;  %v4709_v44 = vpop.f32.mrb[52].mxu0 }
 0x183   :  { %v4749_v47 = vpop.f32.mrb[52].mxu1  ;;  %v4710_v24 = vpop.f32.mrb[53].mxu0 }
 0x184   :  { %1988 = vst [vmem:[#allocation2 + $0x8] sm:$0xff] %v1960_v20  ;;  %v4711_v50 = vadd.f32 %v4710_v24, %v4709_v44  ;;  %v4750_v51 = vpop.f32.mrb[53].mxu1  ;;  %v4712_v52 = vpop.f32.mrb[54].mxu0 }
 0x185   :  { %v4751_v29 = vadd.f32 %v4750_v51, %v4749_v47  ;;  %v4752_v54 = vpop.f32.mrb[54].mxu1  ;;  %v4713_v31 = vpop.f32.mrb[55].mxu0  ;;  %v2003_v51 = vld [vmem:[#allocation5 + $0x20] sm:$0xff] }
 0x186   :  { %v1900_v58 = vadd.f32 %v4711_v50, %v1835_v53  ;;  %v4714_v35 = vadd.f32 %v4713_v31, %v4712_v52  ;;  %v4753_v60 = vpop.f32.mrb[55].mxu1  ;;  %v2004_v52 = vld [vmem:[#allocation5 + $0x28] sm:$0xff]  ;;  %v2006_v31 = vld [vmem:[#allocation5 + $0x38] sm:$0xff] }
 0x187   :  { %v4754_v61 = vadd.f32 %v4753_v60, %v4752_v54  ;;  %v6319_v54 = vpack.c.bf16 %v2004_v52, %v2003_v51 }
 0x188   :  { %v1965_v62 = vadd.f32 %v4751_v29, %v1900_v58  ;;  %v1903_v63 = vadd.f32 %v4714_v35, %v6296_v55  ;;  %v2005_v29 = vld [vmem:[#allocation5 + $0x30] sm:$0xff]  ;;  %v1999_v58 = vld [vmem:[#allocation5] sm:$0xff]  ;;  %v2000_v35 = vld [vmem:[#allocation5 + $0x8] sm:$0xff] }
 0x189   :  { %v6321_v60 = vpack.c.bf16 %v2000_v35, %v1999_v58  ;;  %5159 = vmatpush3.bf16.msra.mxu1 %v6319_v54 }
 0x18a   :  { %1989 = vst [vmem:[#allocation2 + $0x10] sm:$0xff] %v1965_v62  ;;  %v1968_v37 = vadd.f32 %v4754_v61, %v1903_v63  ;;  %v4715_v38 = vpop.f32.mrb[56].mxu0  ;;  %v2001_v61 = vld [vmem:[#allocation5 + $0x10] sm:$0xff]  ;;  %v2002_v62 = vld [vmem:[#allocation5 + $0x18] sm:$0xff]  ;;  %v6324_v63 = vpack.c.bf16 %v2006_v31, %v2005_v29  ;;  %5160 = vmatprep.subr.bf16.mxu1 %v5612_v45 }
 0x18b   :  { %v4755_v1 = vpop.f32.mrb[56].mxu1  ;;  %v4716_v40 = vpop.f32.mrb[57].mxu0  ;;  %5165 = vmatpush3.bf16.msra.mxu0 %v6321_v60 }
 0x18c   :  { %1990 = vst [vmem:[#allocation2 + $0x18] sm:$0xff] %v1968_v37  ;;  %v4717_v3 = vadd.f32 %v4716_v40, %v4715_v38  ;;  %v4756_v4 = vpop.f32.mrb[57].mxu1  ;;  %v4718_v46 = vpop.f32.mrb[58].mxu0  ;;  %v6328_v37 = vpack.c.bf16 %v2002_v62, %v2001_v61  ;;  %5166 = vmatprep.subr.bf16.mxu0 %v5612_v45 }
 0x18d   :  { %v4757_v5 = vadd.f32 %v4756_v4, %v4755_v1  ;;  %v4758_v8 = vpop.f32.mrb[58].mxu1  ;;  %v4719_v9 = vpop.f32.mrb[59].mxu0  ;;  %5162 = vmatpush3.bf16.msra.mxu1 %v6324_v63 }
 0x18e   :  { %v1908_v53 = vadd.f32 %v4717_v3, %v6298_v6  ;;  %v4720_v12 = vadd.f32 %v4719_v9, %v4718_v46  ;;  %v4759_v14 = vpop.f32.mrb[59].mxu1  ;;  %5169 = vmatprep.subr.bf16.mxu1 %v5612_v45 }
 0x18f   :  { %v4760_v15 = vadd.f32 %v4759_v14, %v4758_v8  ;;  %5168 = vmatpush3.bf16.msra.mxu0 %v6328_v37 }
 0x190   :  { %v1973_v16 = vadd.f32 %v4757_v5, %v1908_v53  ;;  %v1911_v55 = vadd.f32 %v4720_v12, %v6301_v48  ;;  %5175 = vmatprep.subr.bf16.mxu0 %v5612_v45  ;;  %4907 = vmatmul.mubr.f32.vlgmr.msra.gmra.mrb[64].mxu1 %v5614_v7  ;;  %v6361_v53 = vld [vmem:[%s6615_s5] ss:$0 sm:$0xff] }
 0x191   :  { %5171 = vmatpush3.bf16.msra.mxu1 %v6230_v49  ;;  %4928 = vmatprep.mubr.msk.f32.mxu1 %vm5613_vm0, %v5614_v7 }
 0x192   :  { %1991 = vst [vmem:[#allocation2 + $0x20] sm:$0xff] %v1973_v16  ;;  %v1976_v57 = vadd.f32 %v4760_v15, %v1911_v55  ;;  %v4721_v17 = vpop.f32.mrb[60].mxu0  ;;  %5172 = vmatprep.subr.bf16.mxu1 %v5612_v45 }
 0x193   :  { %v4761_v19 = vpop.f32.mrb[60].mxu1  ;;  %v4722_v59 = vpop.f32.mrb[61].mxu0  ;;  %v2014_v13 = vld [vmem:[#allocation2] ss:$8 sm:$0xf] }
 0x194   :  { %1992 = vst [vmem:[#allocation2 + $0x28] sm:$0xff] %v1976_v57  ;;  %v4723_v21 = vadd.f32 %v4722_v59, %v4721_v17  ;;  %v4762_v0 = vpop.f32.mrb[61].mxu1  ;;  %v4724_v23 = vpop.f32.mrb[62].mxu0  ;;  %v2287_v8 = vld [vmem:[#allocation2 + $0x1] ss:$8 sm:$0xf] }
 0x195   :  { %v4763_v25 = vadd.f32 %v4762_v0, %v4761_v19  ;;  %v4764_v27 = vpop.f32.mrb[62].mxu1  ;;  %v4725_v28 = vpop.f32.mrb[63].mxu0  ;;  %5174 = vmatpush3.bf16.msra.mxu1 %v6246_v56  ;;  %v2561_v58 = vld [vmem:[#allocation2 + $0x2] ss:$8 sm:$0xf] }
 0x196   :  { %v1916_v6 = vadd.f32 %v4723_v21, %v6303_v26  ;;  %v4726_v30 = vadd.f32 %v4725_v28, %v4724_v23  ;;  %v4765_v10 = vpop.f32.mrb[63].mxu1  ;;  %5181 = vmatprep.subr.bf16.mxu1 %v5612_v45 }
 0x197   :  { %v4766_v32 = vadd.f32 %v4765_v10, %v4764_v27 }
 0x198   :  { %v1981_v33 = vadd.f32 %v4763_v25, %v1916_v6  ;;  %v1919_v48 = vadd.f32 %v4726_v30, %v6306_v2 }
 0x19a   :  { %1993 = vst [vmem:[#allocation2 + $0x30] sm:$0xff] %v1981_v33  ;;  %v1984_v11 = vadd.f32 %v4766_v32, %v1919_v48  ;;  %v2087_v34 = vpop.f32.mrb[64].mxu0 }
 0x19b   :  { %v4897_v36 = vpop.f32.mrb[65].mxu0 }
 0x19c   :  { %1994 = vst [vmem:[#allocation2 + $0x38] sm:$0xff] %v1984_v11 }
 0x1a3   :  { %v2015_v39 = vld [vmem:[#allocation2] ss:$8 sm:$0xf0]  ;;  %v2288_v5 = vld [vmem:[#allocation2 + $0x1] ss:$8 sm:$0xf0] }
 0x1a4   :  { %v2016_v41 = vor.u32 %v2015_v39, %v2014_v13  ;;  %v2289_v9 = vor.u32 %v2288_v5, %v2287_v8  ;;  %v2562_v31 = vld [vmem:[#allocation2 + $0x2] ss:$8 sm:$0xf0] }
 0x1a5   :  { %v2563_v35 = vor.u32 %v2562_v31, %v2561_v58 }
 0x1a6   :  { %v2091_v18 = vadd.f32 %v2087_v34, %v2016_v41 }
 0x1a8   :  { %5432 = vtanh.f32 %v2091_v18  ;;  %v4409_v26 = vmul.f32 -1.442695, %v2091_v18 }
 0x1aa   :  { %5434 = vpow2.f32 %v4409_v26 }
 0x1b2   :  { %v5433_v42 = vpop.eup %5432 }
 0x1b3   :  { %2101 = vrot.lane.b32.xlu0 %v5433_v42, %s5615_s3 }
 0x1b4   :  { %v5435_v43 = vpop.eup %5434 }
 0x1b5   :  { %v2095_v22 = vadd.f32 1.0, %v5435_v43 }
 0x1b7   :  { %5436 = vrcp.f32 %v2095_v22 }
 0x1c1   :  { %v5437_v2 = vpop.eup %5436 }
 0x1c2   :  { %v2099_v47 = vmul.f32 0.0, %v5437_v2 }
 0x225   :  { %v2102_v20 = vpop.permute.xlu0 %2101 }
 0x226   :  { %v2104_v44 = vmul.f32 %v5437_v2, %v2102_v20 }
 0x228   :  { %2106 = vrot.lane.b32.xlu0 %v2104_v44, %s5615_s3 }
 0x263   :  { %v2182_v3 = vpop.f32.mrb[64].mxu1 }
 0x264   :  { %v4908_v4 = vpop.f32.mrb[65].mxu1 }
 0x29a   :  { %v2107_v24 = vpop.permute.xlu0 %2106 }
 0x29b   :  { %v6316_v50 = vadd.f32 %v2107_v24, %v2099_v47 }
 0x29d   :  { %5438 = vtanh.f32 %v6316_v50 }
 0x2a7   :  { %v5439_v38 = vpop.eup %5438 }
 0x2a8   :  { %2112 = vrot.lane.b32.xlu1 %v5439_v38, %s5615_s3 }
 0x31a   :  { %v2113_v1 = vpop.permute.xlu1 %2112 }
 0x31b   :  { %v2115_v40 = vmul.f32 %v5437_v2, %v2113_v1 }
 0x31d   :  { %2187 = vrot.lane.b32.xlu1 %v2115_v40, %s5616_s17 }
 0x38f   :  { %v2188_v46 = vpop.permute.xlu1 %2187 }
 0x390   :  { %4918 = vmatmul.mubr.msk.f32.vlgmr.msra.gmra.mrb[66].mxu0 %vm2017_vm1, %v2188_v46  ;;  %4929 = vmatmul.mubr.msk.f32.vlgmr.msra.gmra.mrb[66].mxu1 %vm2017_vm1, %v2188_v46 }
 0x391   :  { %5183 = vmatpush3.bf16.msra.mxu1 %v6321_v60  ;;  %5177 = vmatpush3.bf16.msra.mxu0 %v6319_v54 }
 0x392   :  { %5184 = vmatprep.subr.bf16.mxu1 %v5612_v45  ;;  %5178 = vmatprep.subr.bf16.mxu0 %v5612_v45 }
 0x393   :  { %4950 = vmatprep.mubr.msk.f32.mxu1 %vm5613_vm0, %v5614_v7  ;;  %4939 = vmatprep.mubr.msk.f32.mxu0 %vm5613_vm0, %v5614_v7 }
 0x395   :  { %5186 = vmatpush3.bf16.msra.mxu1 %v6328_v37  ;;  %5180 = vmatpush3.bf16.msra.mxu0 %v6324_v63 }
 0x396   :  { %5187 = vmatprep.subr.bf16.mxu0 %v5612_v45  ;;  %5193 = vmatprep.subr.bf16.mxu1 %v5612_v45 }
 0x463   :  { %v2257_v12 = vpop.f32.mrb[66].mxu0  ;;  %v2356_v14 = vpop.f32.mrb[66].mxu1 }
 0x464   :  { %v2258_v15 = vadd.f32 %v2257_v12, %v2182_v3  ;;  %v2360_v16 = vadd.f32 %v2356_v14, %v2289_v9  ;;  %v4919_v55 = vpop.f32.mrb[67].mxu0  ;;  %v4930_v57 = vpop.f32.mrb[67].mxu1 }
 0x466   :  { %v2261_v17 = vadd.f32 %v6361_v53, %v2258_v15  ;;  %5440 = vtanh.f32 %v2360_v16  ;;  %v4413_v21 = vmul.f32 -1.442695, %v2360_v16 }
 0x468   :  { %5442 = vtanh.f32 %v2261_v17  ;;  %v4411_v0 = vmul.f32 -1.442695, %v2261_v17 }
 0x469   :  { %5444 = vpow2.f32 %v4413_v21 }
 0x46a   :  { %5446 = vpow2.f32 %v4411_v0 }
 0x470   :  { %v5441_v19 = vpop.eup %5440 }
 0x471   :  { %2370 = vrot.lane.b32.xlu1 %v5441_v19, %s5615_s3 }
 0x472   :  { %v5443_v59 = vpop.eup %5442 }
 0x473   :  { %2271 = vrot.lane.b32.xlu0 %v5443_v59, %s5615_s3  ;;  %v5445_v23 = vpop.eup %5444 }
 0x474   :  { %v5447_v25 = vpop.eup %5446  ;;  %v2364_v27 = vadd.f32 1.0, %v5445_v23 }
 0x475   :  { %v2265_v28 = vadd.f32 1.0, %v5447_v25 }
 0x476   :  { %5448 = vrcp.f32 %v2364_v27 }
 0x477   :  { %5450 = vrcp.f32 %v2265_v28 }
 0x480   :  { %v5449_v6 = vpop.eup %5448 }
 0x481   :  { %v5451_v32 = vpop.eup %5450  ;;  %v2368_v11 = vmul.f32 %v5449_v6, %v6316_v50 }
 0x482   :  { %v2269_v13 = vmul.f32 0.0, %v5451_v32 }
 0x4e3   :  { %v2371_v30 = vpop.permute.xlu1 %2370 }
 0x4e4   :  { %v2373_v10 = vmul.f32 %v5449_v6, %v2371_v30 }
 0x4e5   :  { %v2272_v33 = vpop.permute.xlu0 %2271 }
 0x4e6   :  { %v2274_v48 = vmul.f32 %v5451_v32, %v2272_v33  ;;  %2375 = vrot.lane.b32.xlu1 %v2373_v10, %s5615_s3 }
 0x4e8   :  { %2276 = vrot.lane.b32.xlu0 %v2274_v48, %s5615_s3 }
 0x558   :  { %v2376_v34 = vpop.permute.xlu1 %2375 }
 0x559   :  { %v6369_v36 = vadd.f32 %v2376_v34, %v2368_v11  ;;  %v2836_v34 = vld [vmem:[#allocation2 + $0x3] ss:$8 sm:$0xf0] }
 0x55a   :  { %v2277_v39 = vpop.permute.xlu0 %2276 }
 0x55b   :  { %5452 = vtanh.f32 %v6369_v36  ;;  %v6372_v41 = vadd.f32 %v2277_v39, %v2269_v13  ;;  %v2835_v13 = vld [vmem:[#allocation2 + $0x3] ss:$8 sm:$0xf] }
 0x55d   :  { %5454 = vtanh.f32 %v6372_v41 }
 0x565   :  { %v5453_v18 = vpop.eup %5452 }
 0x566   :  { %2381 = vrot.lane.b32.xlu1 %v5453_v18, %s5615_s3  ;;  %v2837_v18 = vor.u32 %v2836_v34, %v2835_v13 }
 0x567   :  { %v5455_v42 = vpop.eup %5454 }
 0x568   :  { %2282 = vrot.lane.b32.xlu0 %v5455_v42, %s5615_s3 }
 0x5d8   :  { %v2382_v26 = vpop.permute.xlu1 %2381 }
 0x5d9   :  { %v2384_v43 = vmul.f32 %v5449_v6, %v2382_v26 }
 0x5da   :  { %v2283_v22 = vpop.permute.xlu0 %2282 }
 0x5db   :  { %v2285_v2 = vmul.f32 %v5451_v32, %v2283_v22  ;;  %2461 = vrot.lane.b32.xlu1 %v2384_v43, %s5616_s17 }
 0x5dd   :  { %2386 = vrot.lane.b32.xlu0 %v2285_v2, %s5616_s17 }
 0x64d   :  { %v2462_v20 = vpop.permute.xlu1 %2461 }
 0x64e   :  { %4951 = vmatmul.mubr.msk.f32.vlgmr.msra.gmra.mrb[68].mxu1 %vm2017_vm1, %v2462_v20 }
 0x64f   :  { %v2387_v44 = vpop.permute.xlu0 %2386  ;;  %5195 = vmatpush3.bf16.msra.mxu1 %v6319_v54  ;;  %4972 = vmatprep.mubr.msk.f32.mxu1 %vm5613_vm0, %v5614_v7 }
 0x650   :  { %4940 = vmatmul.mubr.msk.f32.vlgmr.msra.gmra.mrb[68].mxu0 %vm2017_vm1, %v2387_v44  ;;  %5196 = vmatprep.subr.bf16.mxu1 %v5612_v45 }
 0x651   :  { %5189 = vmatpush3.bf16.msra.mxu0 %v6230_v49  ;;  %4961 = vmatprep.mubr.msk.f32.mxu0 %vm5613_vm0, %v5614_v7 }
 0x652   :  { %5190 = vmatprep.subr.bf16.mxu0 %v5612_v45 }
 0x653   :  { %5198 = vmatpush3.bf16.msra.mxu1 %v6324_v63 }
 0x654   :  { %5205 = vmatprep.subr.bf16.mxu1 %v5612_v45 }
 0x655   :  { %5192 = vmatpush3.bf16.msra.mxu0 %v6246_v56 }
 0x656   :  { %5199 = vmatprep.subr.bf16.mxu0 %v5612_v45 }
 0x658   :  { %4962 = vmatmul.mubr.msk.f32.vlgmr.msra.gmra.mrb[70].mxu0 %vm2017_vm1, %v2462_v20 }
 0x659   :  { %5201 = vmatpush3.bf16.msra.mxu0 %v6321_v60  ;;  %4983 = vmatprep.mubr.msk.f32.mxu0 %vm5613_vm0, %v5614_v7 }
 0x65a   :  { %5202 = vmatprep.subr.bf16.mxu0 %v5612_v45 }
 0x65d   :  { %5204 = vmatpush3.bf16.msra.mxu0 %v6328_v37 }
 0x65e   :  { %5211 = vmatprep.subr.bf16.mxu0 %v5612_v45 }
 0x721   :  { %v2531_v47 = vpop.f32.mrb[68].mxu1 }
 0x722   :  { %v4952_v24 = vpop.f32.mrb[69].mxu1 }
 0x723   :  { %v2456_v50 = vpop.f32.mrb[68].mxu0 }
 0x724   :  { %v2532_v51 = vadd.f32 %v2531_v47, %v2456_v50  ;;  %v4941_v52 = vpop.f32.mrb[69].mxu0 }
 0x726   :  { %v2535_v29 = vadd.f32 %v6361_v53, %v2532_v51 }
 0x728   :  { %5456 = vtanh.f32 %v2535_v29  ;;  %v4416_v3 = vmul.f32 -1.442695, %v2535_v29 }
 0x72b   :  { %v2630_v61 = vpop.f32.mrb[70].mxu0 }
 0x72c   :  { %v2634_v62 = vadd.f32 %v2630_v61, %v2563_v35  ;;  %v4963_v38 = vpop.f32.mrb[71].mxu0 }
 0x72e   :  { %5458 = vtanh.f32 %v2634_v62  ;;  %v4418_v4 = vmul.f32 -1.442695, %v2634_v62 }
 0x72f   :  { %5460 = vpow2.f32 %v4416_v3 }
 0x730   :  { %5462 = vpow2.f32 %v4418_v4 }
 0x732   :  { %v5457_v1 = vpop.eup %5456 }
 0x733   :  { %2545 = vrot.lane.b32.xlu0 %v5457_v1, %s5615_s3 }
 0x738   :  { %v5459_v40 = vpop.eup %5458 }
 0x739   :  { %2644 = vrot.lane.b32.xlu1 %v5459_v40, %s5615_s3  ;;  %v5461_v46 = vpop.eup %5460 }
 0x73a   :  { %v2539_v5 = vadd.f32 1.0, %v5461_v46  ;;  %v5463_v8 = vpop.eup %5462 }
 0x73b   :  { %v2638_v9 = vadd.f32 1.0, %v5463_v8 }
 0x73c   :  { %5464 = vrcp.f32 %v2539_v5 }
 0x73d   :  { %5466 = vrcp.f32 %v2638_v9 }
 0x746   :  { %v5465_v12 = vpop.eup %5464 }
 0x747   :  { %v5467_v16 = vpop.eup %5466  ;;  %v2543_v17 = vmul.f32 %v5465_v12, %v6372_v41 }
 0x748   :  { %v2642_v21 = vmul.f32 %v5467_v16, %v6369_v36 }
 0x7a5   :  { %v2546_v14 = vpop.permute.xlu0 %2545 }
 0x7a6   :  { %v2548_v15 = vmul.f32 %v5465_v12, %v2546_v14 }
 0x7a8   :  { %2550 = vrot.lane.b32.xlu0 %v2548_v15, %s5615_s3 }
 0x7ab   :  { %v2645_v55 = vpop.permute.xlu1 %2644 }
 0x7ac   :  { %v2647_v57 = vmul.f32 %v5467_v16, %v2645_v55 }
 0x7ae   :  { %2649 = vrot.lane.b32.xlu1 %v2647_v57, %s5615_s3 }
 0x81a   :  { %v2551_v19 = vpop.permute.xlu0 %2550 }
 0x81b   :  { %v6406_v59 = vadd.f32 %v2551_v19, %v2543_v17 }
 0x81d   :  { %5468 = vtanh.f32 %v6406_v59 }
 0x820   :  { %v2650_v0 = vpop.permute.xlu1 %2649 }
 0x821   :  { %v6410_v23 = vadd.f32 %v2650_v0, %v2642_v21 }
 0x823   :  { %5470 = vtanh.f32 %v6410_v23 }
 0x827   :  { %v5469_v25 = vpop.eup %5468 }
 0x828   :  { %2556 = vrot.lane.b32.xlu0 %v5469_v25, %s5615_s3  ;;  %v3109_v25 = vld [vmem:[#allocation2 + $0x4] ss:$8 sm:$0xf] }
 0x82d   :  { %v5471_v27 = vpop.eup %5470 }
 0x82e   :  { %2655 = vrot.lane.b32.xlu1 %v5471_v27, %s5615_s3 }
 0x89a   :  { %v2557_v28 = vpop.permute.xlu0 %2556 }
 0x89b   :  { %v2559_v6 = vmul.f32 %v5465_v12, %v2557_v28 }
 0x89d   :  { %2660 = vrot.lane.b32.xlu0 %v2559_v6, %s5616_s17 }
 0x8a0   :  { %v2656_v30 = vpop.permute.xlu1 %2655 }
 0x8a1   :  { %v2658_v10 = vmul.f32 %v5467_v16, %v2656_v30 }
 0x8a3   :  { %2735 = vrot.lane.b32.xlu1 %v2658_v10, %s5616_s17 }
 0x90f   :  { %v2661_v32 = vpop.permute.xlu0 %2660 }
 0x910   :  { %4973 = vmatmul.mubr.msk.f32.vlgmr.msra.gmra.mrb[70].mxu1 %vm2017_vm1, %v2661_v32 }
 0x911   :  { %5207 = vmatpush3.bf16.msra.mxu1 %v6230_v49  ;;  %4994 = vmatprep.mubr.msk.f32.mxu1 %vm5613_vm0, %v5614_v7 }
 0x912   :  { %5208 = vmatprep.subr.bf16.mxu1 %v5612_v45 }
 0x915   :  { %5210 = vmatpush3.bf16.msra.mxu1 %v6246_v56  ;;  %v2736_v33 = vpop.permute.xlu1 %2735 }
 0x916   :  { %4984 = vmatmul.mubr.msk.f32.vlgmr.msra.gmra.mrb[72].mxu0 %vm2017_vm1, %v2736_v33  ;;  %5217 = vmatprep.subr.bf16.mxu1 %v5612_v45 }
 0x917   :  { %5213 = vmatpush3.bf16.msra.mxu0 %v6319_v54  ;;  %5005 = vmatprep.mubr.msk.f32.mxu0 %vm5613_vm0, %v5614_v7 }
 0x918   :  { %4995 = vmatmul.mubr.msk.f32.vlgmr.msra.gmra.mrb[72].mxu1 %vm2017_vm1, %v2736_v33  ;;  %5214 = vmatprep.subr.bf16.mxu0 %v5612_v45 }
 0x919   :  { %5219 = vmatpush3.bf16.msra.mxu1 %v6321_v60  ;;  %5016 = vmatprep.mubr.msk.f32.mxu1 %vm5613_vm0, %v5614_v7 }
 0x91a   :  { %5220 = vmatprep.subr.bf16.mxu1 %v5612_v45 }
 0x91b   :  { %5216 = vmatpush3.bf16.msra.mxu0 %v6324_v63 }
 0x91c   :  { %5223 = vmatprep.subr.bf16.mxu0 %v5612_v45 }
 0x91d   :  { %5222 = vmatpush3.bf16.msra.mxu1 %v6328_v37 }
 0x91e   :  { %5229 = vmatprep.subr.bf16.mxu1 %v5612_v45 }
 0x9e3   :  { %v2730_v48 = vpop.f32.mrb[70].mxu1 }
 0x9e4   :  { %v4974_v11 = vpop.f32.mrb[71].mxu1 }
 0x9e9   :  { %v2805_v36 = vpop.f32.mrb[72].mxu0 }
 0x9ea   :  { %v2806_v39 = vadd.f32 %v2805_v36, %v2730_v48  ;;  %v4985_v41 = vpop.f32.mrb[73].mxu0 }
 0x9eb   :  { %v2904_v42 = vpop.f32.mrb[72].mxu1 }
 0x9ec   :  { %v2809_v26 = vadd.f32 %v6361_v53, %v2806_v39  ;;  %v2908_v43 = vadd.f32 %v2904_v42, %v2837_v18  ;;  %v4996_v22 = vpop.f32.mrb[73].mxu1 }
 0x9ee   :  { %5472 = vtanh.f32 %v2809_v26  ;;  %v4421_v44 = vmul.f32 -1.442695, %v2809_v26  ;;  %v4423_v47 = vmul.f32 -1.442695, %v2908_v43 }
 0x9ef   :  { %5474 = vtanh.f32 %v2908_v43 }
 0x9f0   :  { %5476 = vpow2.f32 %v4421_v44 }
 0x9f1   :  { %5478 = vpow2.f32 %v4423_v47 }
 0x9f8   :  { %v5473_v2 = vpop.eup %5472 }
 0x9f9   :  { %v5475_v20 = vpop.eup %5474  ;;  %2819 = vrot.lane.b32.xlu0 %v5473_v2, %s5615_s3 }
 0x9fa   :  { %2918 = vrot.lane.b32.xlu1 %v5475_v20, %s5615_s3  ;;  %v5477_v24 = vpop.eup %5476 }
 0x9fb   :  { %v5479_v50 = vpop.eup %5478  ;;  %v2813_v51 = vadd.f32 1.0, %v5477_v24 }
 0x9fc   :  { %v2912_v52 = vadd.f32 1.0, %v5479_v50 }
 0x9fd   :  { %5480 = vrcp.f32 %v2813_v51 }
 0x9fe   :  { %5482 = vrcp.f32 %v2912_v52 }
 0xa07   :  { %v5481_v29 = vpop.eup %5480 }
 0xa08   :  { %v5483_v58 = vpop.eup %5482  ;;  %v2817_v38 = vmul.f32 %v5481_v29, %v6406_v59 }
 0xa09   :  { %v2916_v1 = vmul.f32 %v5483_v58, %v6410_v23  ;;  %v3110_v23 = vld [vmem:[#allocation2 + $0x4] ss:$8 sm:$0xf0] }
 0xa0a   :  { %v3111_v27 = vor.u32 %v3110_v23, %v3109_v25 }
 0xa6b   :  { %v2820_v31 = vpop.permute.xlu0 %2819 }
 0xa6c   :  { %v2919_v35 = vpop.permute.xlu1 %2918  ;;  %v2822_v61 = vmul.f32 %v5481_v29, %v2820_v31 }
 0xa6d   :  { %v2921_v62 = vmul.f32 %v5483_v58, %v2919_v35 }
 0xa6e   :  { %2824 = vrot.lane.b32.xlu0 %v2822_v61, %s5615_s3 }
 0xa6f   :  { %2923 = vrot.lane.b32.xlu1 %v2921_v62, %s5615_s3 }
 0xae0   :  { %v2825_v40 = vpop.permute.xlu0 %2824 }
 0xae1   :  { %v2924_v3 = vpop.permute.xlu1 %2923  ;;  %v6445_v4 = vadd.f32 %v2825_v40, %v2817_v38 }
 0xae2   :  { %v6447_v46 = vadd.f32 %v2924_v3, %v2916_v1  ;;  %v3384_v1 = vld [vmem:[#allocation2 + $0x5] ss:$8 sm:$0xf0] }
 0xae3   :  { %5484 = vtanh.f32 %v6445_v4 }
 0xae4   :  { %5486 = vtanh.f32 %v6447_v46 }
 0xaed   :  { %v5485_v5 = vpop.eup %5484 }
 0xaee   :  { %v5487_v8 = vpop.eup %5486  ;;  %2830 = vrot.lane.b32.xlu0 %v5485_v5, %s5615_s3 }
 0xaef   :  { %2929 = vrot.lane.b32.xlu1 %v5487_v8, %s5615_s3 }
 0xb60   :  { %v2831_v9 = vpop.permute.xlu0 %2830 }
 0xb61   :  { %v2930_v12 = vpop.permute.xlu1 %2929  ;;  %v2833_v14 = vmul.f32 %v5481_v29, %v2831_v9 }
 0xb62   :  { %v2932_v15 = vmul.f32 %v5483_v58, %v2930_v12 }
 0xb63   :  { %2934 = vrot.lane.b32.xlu0 %v2833_v14, %s5616_s17 }
 0xb64   :  { %3009 = vrot.lane.b32.xlu1 %v2932_v15, %s5616_s17 }
 0xbd5   :  { %v2935_v16 = vpop.permute.xlu0 %2934 }
 0xbd6   :  { %v3010_v55 = vpop.permute.xlu1 %3009  ;;  %5006 = vmatmul.mubr.msk.f32.vlgmr.msra.gmra.mrb[74].mxu0 %vm2017_vm1, %v2935_v16 }
 0xbd7   :  { %5017 = vmatmul.mubr.msk.f32.vlgmr.msra.gmra.mrb[74].mxu1 %vm2017_vm1, %v3010_v55  ;;  %5225 = vmatpush3.bf16.msra.mxu0 %v6230_v49 }
 0xbd8   :  { %5226 = vmatprep.subr.bf16.mxu0 %v5612_v45  ;;  %5027 = vmatprep.mubr.msk.f32.mxu0 %vm5613_vm0, %v5614_v7 }
 0xbd9   :  { %5231 = vmatpush3.bf16.msra.mxu1 %v6319_v54  ;;  %5038 = vmatprep.mubr.msk.f32.mxu1 %vm5613_vm0, %v5614_v7 }
 0xbda   :  { %5232 = vmatprep.subr.bf16.mxu1 %v5612_v45 }
 0xbdb   :  { %5228 = vmatpush3.bf16.msra.mxu0 %v6246_v56 }
 0xbdc   :  { %5235 = vmatprep.subr.bf16.mxu0 %v5612_v45 }
 0xbdd   :  { %5234 = vmatpush3.bf16.msra.mxu1 %v6324_v63 }
 0xbde   :  { %5028 = vmatmul.mubr.msk.f32.vlgmr.msra.gmra.mrb[76].mxu0 %vm2017_vm1, %v3010_v55  ;;  %5241 = vmatprep.subr.bf16.mxu1 %v5612_v45 }
 0xbdf   :  { %5237 = vmatpush3.bf16.msra.mxu0 %v6321_v60  ;;  %5049 = vmatprep.mubr.msk.f32.mxu0 %vm5613_vm0, %v5614_v7 }
 0xbe0   :  { %5238 = vmatprep.subr.bf16.mxu0 %v5612_v45 }
 0xbe3   :  { %5240 = vmatpush3.bf16.msra.mxu0 %v6328_v37 }
 0xbe4   :  { %5247 = vmatprep.subr.bf16.mxu0 %v5612_v45 }
 0xca9   :  { %v3004_v57 = vpop.f32.mrb[74].mxu0 }
 0xcaa   :  { %v3079_v17 = vpop.f32.mrb[74].mxu1  ;;  %v5007_v19 = vpop.f32.mrb[75].mxu0 }
 0xcab   :  { %v3080_v59 = vadd.f32 %v3079_v17, %v3004_v57  ;;  %v5018_v21 = vpop.f32.mrb[75].mxu1 }
 0xcad   :  { %v3083_v0 = vadd.f32 %v6361_v53, %v3080_v59 }
 0xcaf   :  { %5488 = vtanh.f32 %v3083_v0  ;;  %v4426_v33 = vmul.f32 -1.442695, %v3083_v0 }
 0xcb1   :  { %v3178_v28 = vpop.f32.mrb[76].mxu0 }
 0xcb2   :  { %v3182_v6 = vadd.f32 %v3178_v28, %v3111_v27  ;;  %v5029_v30 = vpop.f32.mrb[77].mxu0 }
 0xcb4   :  { %5490 = vtanh.f32 %v3182_v6  ;;  %v4428_v48 = vmul.f32 -1.442695, %v3182_v6 }
 0xcb5   :  { %5492 = vpow2.f32 %v4426_v33 }
 0xcb6   :  { %5494 = vpow2.f32 %v4428_v48 }
 0xcb9   :  { %v5489_v10 = vpop.eup %5488 }
 0xcba   :  { %3093 = vrot.lane.b32.xlu0 %v5489_v10, %s5615_s3 }
 0xcbe   :  { %v5491_v32 = vpop.eup %5490 }
 0xcbf   :  { %3192 = vrot.lane.b32.xlu1 %v5491_v32, %s5615_s3  ;;  %v5493_v11 = vpop.eup %5492 }
 0xcc0   :  { %v3087_v34 = vadd.f32 1.0, %v5493_v11  ;;  %v5495_v36 = vpop.eup %5494 }
 0xcc1   :  { %v3186_v13 = vadd.f32 1.0, %v5495_v36 }
 0xcc2   :  { %5496 = vrcp.f32 %v3087_v34 }
 0xcc3   :  { %5498 = vrcp.f32 %v3186_v13 }
 0xccc   :  { %v5497_v39 = vpop.eup %5496 }
 0xccd   :  { %v5499_v42 = vpop.eup %5498  ;;  %v3091_v22 = vmul.f32 %v5497_v39, %v6445_v4 }
 0xcce   :  { %v3190_v44 = vmul.f32 %v5499_v42, %v6447_v46  ;;  %v3383_v46 = vld [vmem:[#allocation2 + $0x5] ss:$8 sm:$0xf] }
 0xccf   :  { %v3385_v5 = vor.u32 %v3384_v1, %v3383_v46 }
 0xd2c   :  { %v3094_v41 = vpop.permute.xlu0 %3093 }
 0xd2d   :  { %v3096_v18 = vmul.f32 %v5497_v39, %v3094_v41 }
 0xd2f   :  { %3098 = vrot.lane.b32.xlu0 %v3096_v18, %s5615_s3 }
 0xd31   :  { %v3193_v26 = vpop.permute.xlu1 %3192 }
 0xd32   :  { %v3195_v43 = vmul.f32 %v5499_v42, %v3193_v26 }
 0xd34   :  { %3197 = vrot.lane.b32.xlu1 %v3195_v43, %s5615_s3 }
 0xda1   :  { %v3099_v2 = vpop.permute.xlu0 %3098 }
 0xda2   :  { %v6482_v20 = vadd.f32 %v3099_v2, %v3091_v22 }
 0xda4   :  { %5500 = vtanh.f32 %v6482_v20 }
 0xda6   :  { %v3198_v47 = vpop.permute.xlu1 %3197 }
 0xda7   :  { %v6486_v24 = vadd.f32 %v3198_v47, %v3190_v44 }
 0xda9   :  { %5502 = vtanh.f32 %v6486_v24 }
 0xdae   :  { %v5501_v50 = vpop.eup %5500 }
 0xdaf   :  { %3104 = vrot.lane.b32.xlu0 %v5501_v50, %s5615_s3  ;;  %v3657_v50 = vld [vmem:[#allocation2 + $0x6] ss:$8 sm:$0xf] }
 0xdb3   :  { %v5503_v51 = vpop.eup %5502 }
 0xdb4   :  { %3203 = vrot.lane.b32.xlu1 %v5503_v51, %s5615_s3 }
 0xe21   :  { %v3105_v52 = vpop.permute.xlu0 %3104 }
 0xe22   :  { %v3107_v29 = vmul.f32 %v5497_v39, %v3105_v52 }
 0xe24   :  { %3208 = vrot.lane.b32.xlu0 %v3107_v29, %s5616_s17 }
 0xe26   :  { %v3204_v31 = vpop.permute.xlu1 %3203 }
 0xe27   :  { %v3206_v58 = vmul.f32 %v5499_v42, %v3204_v31 }
 0xe29   :  { %3283 = vrot.lane.b32.xlu1 %v3206_v58, %s5616_s17 }
 0xe96   :  { %v3209_v35 = vpop.permute.xlu0 %3208 }
 0xe97   :  { %5039 = vmatmul.mubr.msk.f32.vlgmr.msra.gmra.mrb[76].mxu1 %vm2017_vm1, %v3209_v35 }
 0xe98   :  { %5243 = vmatpush3.bf16.msra.mxu1 %v6230_v49  ;;  %5060 = vmatprep.mubr.msk.f32.mxu1 %vm5613_vm0, %v5614_v7 }
 0xe99   :  { %5244 = vmatprep.subr.bf16.mxu1 %v5612_v45 }
 0xe9b   :  { %v3284_v61 = vpop.permute.xlu1 %3283 }
 0xe9c   :  { %5246 = vmatpush3.bf16.msra.mxu1 %v6246_v56  ;;  %5050 = vmatmul.mubr.msk.f32.vlgmr.msra.gmra.mrb[78].mxu0 %vm2017_vm1, %v3284_v61 }
 0xe9d   :  { %5249 = vmatpush3.bf16.msra.mxu0 %v6319_v54  ;;  %5253 = vmatprep.subr.bf16.mxu1 %v5612_v45 }
 0xe9e   :  { %5250 = vmatprep.subr.bf16.mxu0 %v5612_v45  ;;  %5071 = vmatprep.mubr.msk.f32.mxu0 %vm5613_vm0, %v5614_v7 }
 0xe9f   :  { %5061 = vmatmul.mubr.msk.f32.vlgmr.msra.gmra.mrb[78].mxu1 %vm2017_vm1, %v3284_v61 }
 0xea0   :  { %5255 = vmatpush3.bf16.msra.mxu1 %v6321_v60  ;;  %5082 = vmatprep.mubr.msk.f32.mxu1 %vm5613_vm0, %v5614_v7 }
 0xea1   :  { %5252 = vmatpush3.bf16.msra.mxu0 %v6324_v63  ;;  %5256 = vmatprep.subr.bf16.mxu1 %v5612_v45 }
 0xea2   :  { %5259 = vmatprep.subr.bf16.mxu0 %v5612_v45 }
 0xea4   :  { %5258 = vmatpush3.bf16.msra.mxu1 %v6328_v37 }
 0xea5   :  { %5265 = vmatprep.subr.bf16.mxu1 %v5612_v45 }
 0xf6a   :  { %v3278_v62 = vpop.f32.mrb[76].mxu1 }
 0xf6b   :  { %v5040_v38 = vpop.f32.mrb[77].mxu1 }
 0xf6f   :  { %v3353_v40 = vpop.f32.mrb[78].mxu0 }
 0xf70   :  { %v3354_v3 = vadd.f32 %v3353_v40, %v3278_v62  ;;  %v5051_v4 = vpop.f32.mrb[79].mxu0 }
 0xf72   :  { %v3357_v8 = vadd.f32 %v6361_v53, %v3354_v3  ;;  %v3452_v9 = vpop.f32.mrb[78].mxu1 }
 0xf73   :  { %v3456_v12 = vadd.f32 %v3452_v9, %v3385_v5  ;;  %v5062_v14 = vpop.f32.mrb[79].mxu1 }
 0xf74   :  { %5504 = vtanh.f32 %v3357_v8  ;;  %v4431_v55 = vmul.f32 -1.442695, %v3357_v8 }
 0xf75   :  { %5506 = vtanh.f32 %v3456_v12  ;;  %v4433_v57 = vmul.f32 -1.442695, %v3456_v12 }
 0xf76   :  { %5508 = vpow2.f32 %v4431_v55 }
 0xf77   :  { %5510 = vpow2.f32 %v4433_v57 }
 0xf7e   :  { %v5505_v15 = vpop.eup %5504 }
 0xf7f   :  { %v5507_v16 = vpop.eup %5506  ;;  %3367 = vrot.lane.b32.xlu0 %v5505_v15, %s5615_s3 }
 0xf80   :  { %3466 = vrot.lane.b32.xlu1 %v5507_v16, %s5615_s3  ;;  %v5509_v17 = vpop.eup %5508 }
 0xf81   :  { %v5511_v19 = vpop.eup %5510  ;;  %v3361_v59 = vadd.f32 1.0, %v5509_v17 }
 0xf82   :  { %v3460_v21 = vadd.f32 1.0, %v5511_v19 }
 0xf83   :  { %5512 = vrcp.f32 %v3361_v59 }
 0xf84   :  { %5514 = vrcp.f32 %v3460_v21 }
 0xf8d   :  { %v5513_v0 = vpop.eup %5512 }
 0xf8e   :  { %v5515_v25 = vpop.eup %5514  ;;  %v3365_v30 = vmul.f32 %v5513_v0, %v6482_v20 }
 0xf8f   :  { %v3464_v10 = vmul.f32 %v5515_v25, %v6486_v24  ;;  %v3658_v24 = vld [vmem:[#allocation2 + $0x6] ss:$8 sm:$0xf0] }
 0xf90   :  { %v3659_v51 = vor.u32 %v3658_v24, %v3657_v50 }
 0xff1   :  { %v3368_v23 = vpop.permute.xlu0 %3367 }
 0xff2   :  { %v3467_v27 = vpop.permute.xlu1 %3466  ;;  %v3370_v28 = vmul.f32 %v5513_v0, %v3368_v23 }
 0xff3   :  { %v3469_v6 = vmul.f32 %v5515_v25, %v3467_v27 }
 0xff4   :  { %3372 = vrot.lane.b32.xlu0 %v3370_v28, %s5615_s3 }
 0xff5   :  { %3471 = vrot.lane.b32.xlu1 %v3469_v6, %s5615_s3 }
0x1066   :  { %v3373_v32 = vpop.permute.xlu0 %3372 }
0x1067   :  { %v3472_v33 = vpop.permute.xlu1 %3471  ;;  %v6521_v48 = vadd.f32 %v3373_v32, %v3365_v30  ;;  %v3931_v32 = vld [vmem:[#allocation2 + $0x7] ss:$8 sm:$0xf] }
0x1068   :  { %v6523_v11 = vadd.f32 %v3472_v33, %v3464_v10 }
0x1069   :  { %5516 = vtanh.f32 %v6521_v48 }
0x106a   :  { %5518 = vtanh.f32 %v6523_v11 }
0x1073   :  { %v5517_v34 = vpop.eup %5516 }
0x1074   :  { %v5519_v36 = vpop.eup %5518  ;;  %3378 = vrot.lane.b32.xlu0 %v5517_v34, %s5615_s3 }
0x1075   :  { %3477 = vrot.lane.b32.xlu1 %v5519_v36, %s5615_s3 }
0x10e6   :  { %v3379_v13 = vpop.permute.xlu0 %3378 }
0x10e7   :  { %v3478_v39 = vpop.permute.xlu1 %3477  ;;  %v3381_v41 = vmul.f32 %v5513_v0, %v3379_v13 }
0x10e8   :  { %v3480_v18 = vmul.f32 %v5515_v25, %v3478_v39 }
0x10e9   :  { %3482 = vrot.lane.b32.xlu0 %v3381_v41, %s5616_s17 }
0x10ea   :  { %3557 = vrot.lane.b32.xlu1 %v3480_v18, %s5616_s17 }
0x115b   :  { %v3483_v42 = vpop.permute.xlu0 %3482 }
0x115c   :  { %v3558_v26 = vpop.permute.xlu1 %3557  ;;  %5072 = vmatmul.mubr.msk.f32.vlgmr.msra.gmra.mrb[80].mxu0 %vm2017_vm1, %v3483_v42 }
0x115d   :  { %5083 = vmatmul.mubr.msk.f32.vlgmr.msra.gmra.mrb[80].mxu1 %vm2017_vm1, %v3558_v26  ;;  %5261 = vmatpush3.bf16.msra.mxu0 %v6230_v49 }
0x115e   :  { %5262 = vmatprep.subr.bf16.mxu0 %v5612_v45  ;;  %5093 = vmatprep.mubr.msk.f32.mxu0 %vm5613_vm0, %v5614_v7 }
0x115f   :  { %5267 = vmatpush3.bf16.msra.mxu1 %v6319_v54  ;;  %5104 = vmatprep.mubr.msk.f32.mxu1 %vm5613_vm0, %v5614_v7 }
0x1160   :  { %5268 = vmatprep.subr.bf16.mxu1 %v5612_v45 }
0x1161   :  { %5264 = vmatpush3.bf16.msra.mxu0 %v6246_v56 }
0x1162   :  { %5271 = vmatprep.subr.bf16.mxu0 %v5612_v45 }
0x1163   :  { %5270 = vmatpush3.bf16.msra.mxu1 %v6324_v63 }
0x1164   :  { %5094 = vmatmul.mubr.msk.f32.vlgmr.msra.gmra.mrb[82].mxu0 %vm2017_vm1, %v3558_v26  ;;  %5277 = vmatprep.subr.bf16.mxu1 %v5612_v45 }
0x1165   :  { %5273 = vmatpush3.bf16.msra.mxu0 %v6321_v60  ;;  %5115 = vmatprep.mubr.msk.f32.mxu0 %vm5613_vm0, %v5614_v7 }
0x1166   :  { %5274 = vmatprep.subr.bf16.mxu0 %v5612_v45 }
0x1169   :  { %5276 = vmatpush3.bf16.msra.mxu0 %v6328_v37 }
0x116a   :  { %5283 = vmatprep.subr.bf16.mxu0 %v5612_v45 }
0x122f   :  { %v3552_v43 = vpop.f32.mrb[80].mxu0 }
0x1230   :  { %v3627_v22 = vpop.f32.mrb[80].mxu1  ;;  %v5073_v2 = vpop.f32.mrb[81].mxu0 }
0x1231   :  { %v3628_v20 = vadd.f32 %v3627_v22, %v3552_v43  ;;  %v5084_v44 = vpop.f32.mrb[81].mxu1 }
0x1233   :  { %v3631_v47 = vadd.f32 %v6361_v53, %v3628_v20 }
0x1235   :  { %5520 = vtanh.f32 %v3631_v47  ;;  %v4436_v61 = vmul.f32 -1.442695, %v3631_v47 }
0x1237   :  { %v3726_v52 = vpop.f32.mrb[82].mxu0 }
0x1238   :  { %v3730_v29 = vadd.f32 %v3726_v52, %v3659_v51  ;;  %v5095_v31 = vpop.f32.mrb[83].mxu0 }
0x123a   :  { %5522 = vtanh.f32 %v3730_v29  ;;  %v4438_v62 = vmul.f32 -1.442695, %v3730_v29 }
0x123b   :  { %5524 = vpow2.f32 %v4436_v61 }
0x123c   :  { %5526 = vpow2.f32 %v4438_v62 }
0x123f   :  { %v5521_v58 = vpop.eup %5520 }
0x1240   :  { %3641 = vrot.lane.b32.xlu0 %v5521_v58, %s5615_s3 }
0x1244   :  { %v5523_v35 = vpop.eup %5522 }
0x1245   :  { %3740 = vrot.lane.b32.xlu1 %v5523_v35, %s5615_s3  ;;  %v5525_v38 = vpop.eup %5524 }
0x1246   :  { %v3635_v1 = vadd.f32 1.0, %v5525_v38  ;;  %v5527_v40 = vpop.eup %5526 }
0x1247   :  { %v3734_v3 = vadd.f32 1.0, %v5527_v40 }
0x1248   :  { %5528 = vrcp.f32 %v3635_v1 }
0x1249   :  { %5530 = vrcp.f32 %v3734_v3 }
0x1252   :  { %v5529_v4 = vpop.eup %5528 }
0x1253   :  { %v5531_v8 = vpop.eup %5530  ;;  %v3639_v14 = vmul.f32 %v5529_v4, %v6521_v48 }
0x1254   :  { %v3738_v55 = vmul.f32 %v5531_v8, %v6523_v11 }
0x12b2   :  { %v3642_v46 = vpop.permute.xlu0 %3641 }
0x12b3   :  { %v3644_v5 = vmul.f32 %v5529_v4, %v3642_v46 }
0x12b5   :  { %3646 = vrot.lane.b32.xlu0 %v3644_v5, %s5615_s3 }
0x12b7   :  { %v3741_v9 = vpop.permute.xlu1 %3740 }
0x12b8   :  { %v3743_v12 = vmul.f32 %v5531_v8, %v3741_v9 }
0x12ba   :  { %3745 = vrot.lane.b32.xlu1 %v3743_v12, %s5615_s3 }
0x1327   :  { %v3647_v15 = vpop.permute.xlu0 %3646 }
0x1328   :  { %v6558_v16 = vadd.f32 %v3647_v15, %v3639_v14 }
0x132a   :  { %5532 = vtanh.f32 %v6558_v16 }
0x132c   :  { %v3746_v57 = vpop.permute.xlu1 %3745 }
0x132d   :  { %v6562_v17 = vadd.f32 %v3746_v57, %v3738_v55 }
0x132f   :  { %5534 = vtanh.f32 %v6562_v17 }
0x1334   :  { %v5533_v19 = vpop.eup %5532 }
0x1335   :  { %3652 = vrot.lane.b32.xlu0 %v5533_v19, %s5615_s3 }
0x1339   :  { %v5535_v59 = vpop.eup %5534 }
0x133a   :  { %3751 = vrot.lane.b32.xlu1 %v5535_v59, %s5615_s3 }
0x13a7   :  { %v3653_v21 = vpop.permute.xlu0 %3652 }
0x13a8   :  { %v3655_v0 = vmul.f32 %v5529_v4, %v3653_v21 }
0x13aa   :  { %3756 = vrot.lane.b32.xlu0 %v3655_v0, %s5616_s17 }
0x13ac   :  { %v3752_v23 = vpop.permute.xlu1 %3751 }
0x13ad   :  { %v3754_v25 = vmul.f32 %v5531_v8, %v3752_v23 }
0x13af   :  { %3831 = vrot.lane.b32.xlu1 %v3754_v25, %s5616_s17 }
0x141c   :  { %v3757_v27 = vpop.permute.xlu0 %3756 }
0x141d   :  { %5105 = vmatmul.mubr.msk.f32.vlgmr.msra.gmra.mrb[82].mxu1 %vm2017_vm1, %v3757_v27 }
0x141e   :  { %5279 = vmatpush3.bf16.msra.mxu1 %v6230_v49  ;;  %5126 = vmatprep.mubr.msk.f32.mxu1 %vm5613_vm0, %v5614_v7 }
0x141f   :  { %5280 = vmatprep.subr.bf16.mxu1 %v5612_v45 }
0x1421   :  { %v3832_v28 = vpop.permute.xlu1 %3831 }
0x1422   :  { %5282 = vmatpush3.bf16.msra.mxu1 %v6246_v56  ;;  %5116 = vmatmul.mubr.msk.f32.vlgmr.msra.gmra.mrb[84].mxu0 %vm2017_vm1, %v3832_v28 }
0x1423   :  { %5289 = vmatprep.subr.bf16.mxu1 %v5612_v45  ;;  %5285 = vmatpush3.bf16.msra.mxu0 %v6319_v54  ;;  %v3932_v54 = vld [vmem:[#allocation2 + $0x7] ss:$8 sm:$0xf0] }
0x1424   :  { %5286 = vmatprep.subr.bf16.mxu0 %v5612_v45  ;;  %5137 = vmatprep.mubr.msk.f32.mxu0 %vm5613_vm0, %v5614_v7  ;;  %v3933_v33 = vor.u32 %v3932_v54, %v3931_v32 }
0x1425   :  { %5127 = vmatmul.mubr.msk.f32.vlgmr.msra.gmra.mrb[84].mxu1 %vm2017_vm1, %v3832_v28 }
0x1426   :  { %5291 = vmatpush3.bf16.msra.mxu1 %v6321_v60  ;;  %5148 = vmatprep.mubr.msk.f32.mxu1 %vm5613_vm0, %v5614_v7 }
0x1427   :  { %5292 = vmatprep.subr.bf16.mxu1 %v5612_v45  ;;  %5288 = vmatpush3.bf16.msra.mxu0 %v6324_v63 }
0x142a   :  { %5294 = vmatpush3.bf16.msra.mxu1 %v6328_v37 }
0x14f0   :  { %v3826_v49 = vpop.f32.mrb[82].mxu1 }
0x14f1   :  { %v5106_v56 = vpop.f32.mrb[83].mxu1 }
0x14f5   :  { %v3901_v6 = vpop.f32.mrb[84].mxu0 }
0x14f6   :  { %v3902_v30 = vadd.f32 %v3901_v6, %v3826_v49  ;;  %v5117_v10 = vpop.f32.mrb[85].mxu0 }
0x14f8   :  { %v3905_v48 = vadd.f32 %v6361_v53, %v3902_v30  ;;  %v4000_v60 = vpop.f32.mrb[84].mxu1 }
0x14f9   :  { %v4004_v11 = vadd.f32 %v4000_v60, %v3933_v33  ;;  %v5128_v34 = vpop.f32.mrb[85].mxu1 }
0x14fa   :  { %5536 = vtanh.f32 %v3905_v48  ;;  %v4441_v63 = vmul.f32 -1.442695, %v3905_v48 }
0x14fb   :  { %5538 = vtanh.f32 %v4004_v11  ;;  %v4443_v37 = vmul.f32 -1.442695, %v4004_v11 }
0x14fc   :  { %5540 = vpow2.f32 %v4441_v63 }
0x14fd   :  { %5542 = vpow2.f32 %v4443_v37 }
0x1504   :  { %v5537_v45 = vpop.eup %5536 }
0x1505   :  { %v5539_v7 = vpop.eup %5538  ;;  %3915 = vrot.lane.b32.xlu0 %v5537_v45, %s5615_s3 }
0x1506   :  { %4014 = vrot.lane.b32.xlu1 %v5539_v7, %s5615_s3  ;;  %v5541_v36 = vpop.eup %5540 }
0x1507   :  { %v5543_v13 = vpop.eup %5542  ;;  %v3909_v39 = vadd.f32 1.0, %v5541_v36 }
0x1508   :  { %v4008_v41 = vadd.f32 1.0, %v5543_v13 }
0x1509   :  { %5544 = vrcp.f32 %v3909_v39 }
0x150a   :  { %5546 = vrcp.f32 %v4008_v41 }
0x1513   :  { %v5545_v18 = vpop.eup %5544 }
0x1514   :  { %v5547_v26 = vpop.eup %5546  ;;  %v3913_v20 = vmul.f32 %v5545_v18, %v6558_v16 }
0x1515   :  { %v4012_v44 = vmul.f32 %v5547_v26, %v6562_v17 }
0x1577   :  { %v3916_v42 = vpop.permute.xlu0 %3915 }
0x1578   :  { %v4015_v43 = vpop.permute.xlu1 %4014  ;;  %v3918_v22 = vmul.f32 %v5545_v18, %v3916_v42 }
0x1579   :  { %v4017_v2 = vmul.f32 %v5547_v26, %v4015_v43 }
0x157a   :  { %3920 = vrot.lane.b32.xlu0 %v3918_v22, %s5615_s3 }
0x157b   :  { %4019 = vrot.lane.b32.xlu1 %v4017_v2, %s5615_s3 }
0x15ec   :  { %v3921_v47 = vpop.permute.xlu0 %3920 }
0x15ed   :  { %v4020_v24 = vpop.permute.xlu1 %4019  ;;  %v3923_v50 = vadd.f32 %v3921_v47, %v3913_v20 }
0x15ee   :  { %v4022_v51 = vadd.f32 %v4020_v24, %v4012_v44 }
0x15ef   :  { %5548 = vtanh.f32 %v3923_v50 }
0x15f0   :  { %5550 = vtanh.f32 %v4022_v51 }
0x15f9   :  { %v5549_v52 = vpop.eup %5548 }
0x15fa   :  { %v5551_v29 = vpop.eup %5550  ;;  %3926 = vrot.lane.b32.xlu0 %v5549_v52, %s5615_s3 }
0x15fb   :  { %4025 = vrot.lane.b32.xlu1 %v5551_v29, %s5615_s3 }
0x166c   :  { %v3927_v31 = vpop.permute.xlu0 %3926 }
0x166d   :  { %v4026_v58 = vpop.permute.xlu1 %4025  ;;  %v3929_v35 = vmul.f32 %v5545_v18, %v3927_v31 }
0x166e   :  { %v4028_v61 = vmul.f32 %v5547_v26, %v4026_v58 }
0x166f   :  { %4030 = vrot.lane.b32.xlu0 %v3929_v35, %s5616_s17 }
0x1670   :  { %4105 = vrot.lane.b32.xlu1 %v4028_v61, %s5616_s17 }
0x16e1   :  { %v4031_v62 = vpop.permute.xlu0 %4030 }
0x16e2   :  { %v4106_v38 = vpop.permute.xlu1 %4105  ;;  %5138 = vmatmul.mubr.msk.f32.vlgmr.msra.gmra.mrb[86].mxu0 %vm2017_vm1, %v4031_v62 }
0x16e3   :  { %5149 = vmatmul.mubr.msk.f32.vlgmr.msra.gmra.mrb[86].mxu1 %vm2017_vm1, %v4106_v38 }
0x17b5   :  { %v4100_v1 = vpop.f32.mrb[86].mxu0 }
0x17b6   :  { %v4175_v40 = vpop.f32.mrb[86].mxu1  ;;  %v5139_v3 = vpop.f32.mrb[87].mxu0 }
0x17b7   :  { %v4176_v4 = vadd.f32 %v4175_v40, %v4100_v1  ;;  %v5150_v46 = vpop.f32.mrb[87].mxu1 }
0x17b9   :  { %v4179_v5 = vadd.f32 %v6361_v53, %v4176_v4 }
0x17bb   :  { %5552 = vtanh.f32 %v4179_v5  ;;  %v4446_v9 = vmul.f32 -1.442695, %v4179_v5 }
0x17bd   :  { %5554 = vpow2.f32 %v4446_v9 }
0x17c5   :  { %v5553_v8 = vpop.eup %5552 }
0x17c6   :  { %4189 = vrot.lane.b32.xlu0 %v5553_v8, %s5615_s3 }
0x17c7   :  { %v5555_v12 = vpop.eup %5554 }
0x17c8   :  { %v4183_v14 = vadd.f32 1.0, %v5555_v12 }
0x17ca   :  { %5556 = vrcp.f32 %v4183_v14 }
0x17d4   :  { %v5557_v15 = vpop.eup %5556 }
0x17d5   :  { %v4187_v57 = vmul.f32 %v5557_v15, %v3923_v50 }
0x1838   :  { %v4190_v16 = vpop.permute.xlu0 %4189 }
0x1839   :  { %v4192_v55 = vmul.f32 %v5557_v15, %v4190_v16 }
0x183b   :  { %4194 = vrot.lane.b32.xlu1 %v4192_v55, %s5615_s3 }
0x18ad   :  { %v4195_v17 = vpop.permute.xlu1 %4194 }
0x18ae   :  { %v4197_v19 = vadd.f32 %v4195_v17, %v4187_v57 }
0x18b0   :  { %5558 = vtanh.f32 %v4197_v19 }
0x18ba   :  { %v5559_v59 = vpop.eup %5558 }
0x18bb   :  { %4200 = vrot.lane.b32.xlu0 %v5559_v59, %s5615_s3 }
0x192d   :  { %v4201_v53 = vpop.permute.xlu0 %4200 }
0x192e   :  { %v4203_v21 = vmul.f32 %v5557_v15, %v4201_v53 }
0x1930   :  { %4205 = vrot.lane.b32.xlu1 %v4203_v21, %s5616_s17 }
0x19a2   :  { %v4206_v0 = vpop.permute.xlu1 %4205 }
0x19a3   :  { %4208 = vst.msk [vmem:[%s6616_s6] sm:$0xff] %vm2017_vm1, %v4206_v0 }
0x19a4   :  { %4213 = vsyncpa [#allocation4], 1 }
0x19a5   :  { %4214 = vsyncpa [#allocation6], 1 }

</bundles_post_ra>
